<compile_context>
chip_gen: v7x
topology: tpu7x:2x2x1
jax: 0.10.0
libtpu: 0.0.40
codegen_flags: <defaults>
</compile_context>

<pallas_src>
import jax
import jax.numpy as jnp
from jax.experimental import pallas as pl
from jax.experimental.pallas import tpu as pltpu

# ---- problem sizes (small, consistent with the module's forward) -----------
B, R, C, D = 2, 8, 16, 32          # batch, rows (h), cols (w), feature dim
HEADS, DIM_HEAD = 2, 16
INNER = HEADS * DIM_HEAD           # = 32
RC = R * C                         # folded (rows, cols) per batch = 128
EPS = 1e-5
SCALE = DIM_HEAD ** -0.5
MASK_FILL = float(jnp.finfo(jnp.float32).max)   # torch uses -finfo.max
SAFE_FILL = 0.5 * MASK_FILL                     # additive fill, cannot overflow


# ---- Pallas kernel (bb = folded batches handled per grid step, static) ------
def _make_kernel(bb):
    def kernel(x_ref, bias_ref, ln_w_ref, ln_b_ref,
               wf_ref, bg_ref, wo_ref, bo_ref, o_ref):
        # x_ref: (D, bb*RC) — features on sublanes, folded tokens on lanes
        xt = x_ref[...]

        # LayerNorm over the feature (sublane) axis; one-pass variance
        mu = jnp.mean(xt, axis=0, keepdims=True)                      # (1, bb*RC)
        var = jnp.mean(xt * xt, axis=0, keepdims=True) - mu * mu
        xn = (xt - mu) * jax.lax.rsqrt(var + EPS) * ln_w_ref[...] + ln_b_ref[...]

        # fused q|k|v|gate projection: (4*INNER, D) @ (D, bb*RC) -> (128, bb*RC)
        proj = jnp.dot(wf_ref[...], xn, preferred_element_type=jnp.float32)

        # gating rows (3*INNER:), sigmoid on the VPU/EUP
        gates = jax.nn.sigmoid(proj[3 * INNER:, :] + bg_ref[...])     # (INNER, bb*RC)

        for b in range(bb):                        # static unroll over folded batches
            cols = slice(b * RC, (b + 1) * RC)     # lane slice at a 128 boundary
            head_outs = []
            for h in range(HEADS):                 # static unroll over heads
                r0 = h * DIM_HEAD                  # sublane offsets, multiples of 16
                qh = proj[0 * INNER + r0:0 * INNER + r0 + DIM_HEAD, cols] * SCALE
                kh = proj[1 * INNER + r0:1 * INNER + r0 + DIM_HEAD, cols]
                vh = proj[2 * INNER + r0:2 * INNER + r0 + DIM_HEAD, cols]

                # dense logits over the folded sequence: contract the 16-wide
                # head dim -> one (128, 128) full-lane MXU GEMM
                dots = jax.lax.dot_general(
                    qh, kh, (((0,), (0,)), ((), ())),
                    preferred_element_type=jnp.float32)                # (RC, RC)
                dots = dots + bias_ref[b, h]       # additive mask + edge bias

                # lane-dense softmax over the 128-wide last axis
                dots = dots - jnp.max(dots, axis=-1, keepdims=True)
                p = jnp.exp(dots)
                p = p * pl.reciprocal(jnp.sum(p, axis=-1, keepdims=True),
                                      approx=True)

                # out^T = V_h @ P^T : (DH,128) x (128,128), contract on lanes
                oh = jax.lax.dot_general(
                    vh, p, (((1,), (1,)), ((), ())),
                    preferred_element_type=jnp.float32)                # (DH, RC)
                head_outs.append(oh * gates[r0:r0 + DIM_HEAD, cols])

            # both heads through one (D, INNER) x (INNER, RC) output GEMM
            gated = jnp.concatenate(head_outs, axis=0)                 # (INNER, RC)
            y = jnp.dot(wo_ref[...], gated, preferred_element_type=jnp.float32)
            o_ref[:, cols] = y + bo_ref[...]                           # lane-dense store
    return kernel


# ---- grid sizing: keep 2-way core parallelism on v7x, fold on single-TC ------
def _batches_per_step():
    try:
        kind = jax.devices()[0].device_kind.lower()
    except Exception:
        return 1
    single_tc = any(t in kind for t in
                    ("v5e", "v5 lite", "v5lite", "v6e", "v6 lite", "v6lite"))
    return B if single_tc else 1


# ---- combined additive logit bias (mask + edge bias), built once in wrapper --
def _build_logit_bias(edges, mask, we):
    hp = jax.lax.Precision.HIGHEST
    edge_bias = jnp.einsum('bijd,hd->bhij', edges, we, precision=hp)   # (B,H,C,C)
    mf = mask.astype(jnp.float32)                                      # (B,R,C)
    pm = mf[:, :, :, None] * mf[:, :, None, :]                         # (B,R,C,C)
    # same-row (block-diagonal) entries: edge bias where pair mask is set,
    # overflow-safe huge negative fill otherwise
    diag = jnp.where(pm[:, None] > 0.5, edge_bias[:, :, None], -SAFE_FILL)  # (B,H,R,C,C)
    same_row = jnp.eye(R, dtype=bool)[None, None, :, None, :, None]    # (1,1,R,1,R,1)
    # off-diagonal blocks get -inf so masked query rows stay uniform over C
    bias6 = jnp.where(same_row, diag[:, :, :, :, None, :], -jnp.inf)   # (B,H,R,C,R,C)
    return bias6.reshape(B, HEADS, RC, RC).astype(jnp.float32)


# ---- wrapper -----------------------------------------------------------------
def axial_attention_forward(x, edges, mask, params):
    """x: (B,R,C,D) f32, edges: (B,C,C,D) f32, mask: (B,R,C) bool."""
    ln_w, ln_b, wq, wkv, wg, bg, wo, bo, we = params

    bb = _batches_per_step()
    grid = (B // bb,)

    # transposed activation layout: (D, B*RC), token (b,r,c) -> lane b*RC + r*C + c
    xT = x.reshape(B * RC, D).T

    bias_full = _build_logit_bias(edges, mask, we)       # (B, HEADS, RC, RC)

    # fused, transposed projection weight: rows = [ q | k | v | gate ]
    wfT = jnp.concatenate([wq, wkv, wg], axis=1).T        # (4*INNER, D) = (128, 32)

    def const_spec(shape):
        return pl.BlockSpec(shape, lambda g: (0,) * len(shape))

    out_T = pl.pallas_call(
        _make_kernel(bb),
        out_shape=jax.ShapeDtypeStruct((D, B * RC), jnp.float32),
        grid_spec=pltpu.PrefetchScalarGridSpec(
            num_scalar_prefetch=0,
            grid=grid,
            in_specs=[
                pl.BlockSpec((D, bb * RC), lambda g: (0, g)),                # x^T
                pl.BlockSpec((bb, HEADS, RC, RC), lambda g: (g, 0, 0, 0)),   # logit bias
                const_spec((D, 1)),             # ln_w
                const_spec((D, 1)),             # ln_b
                const_spec((4 * INNER, D)),     # fused W^T (q|k|v|gate)
                const_spec((INNER, 1)),         # gating bias
                const_spec((D, INNER)),         # Wo^T
                const_spec((D, 1)),             # bo
            ],
            out_specs=pl.BlockSpec((D, bb * RC), lambda g: (0, g)),
        ),
        compiler_params=pltpu.CompilerParams(
            dimension_semantics=("parallel",)),
    )(xT, bias_full,
      ln_w.reshape(D, 1), ln_b.reshape(D, 1),
      wfT, bg.reshape(INNER, 1), wo.T, bo.reshape(D, 1))

    return out_T.T.reshape(B, R, C, D)


# ---- pure-JAX reference (mirrors the PyTorch math) ----------------------------
def reference_forward(x, edges, mask, params):
    ln_w, ln_b, wq, wkv, wg, bg, wo, bo, we = params
    hp = jax.lax.Precision.HIGHEST

    mu = x.mean(-1, keepdims=True)
    xc = x - mu
    var = (xc * xc).mean(-1, keepdims=True)
    xn = xc / jnp.sqrt(var + EPS) * ln_w[0] + ln_b[0]
    xf = xn.reshape(B * R, C, D)
    mf = mask.reshape(B * R, C)

    q = jnp.einsum('bnd,de->bne', xf, wq, precision=hp)
    kv = jnp.einsum('bnd,de->bne', xf, wkv, precision=hp)
    k, v = kv[..., :INNER], kv[..., INNER:]

    def split(t):
        return t.reshape(B * R, C, HEADS, DIM_HEAD).transpose(0, 2, 1, 3)

    q, k, v = split(q) * SCALE, split(k), split(v)
    dots = jnp.einsum('bhid,bhjd->bhij', q, k, precision=hp)

    bias = jnp.einsum('bijd,hd->bhij', edges, we, precision=hp)   # (B, HEADS, C, C)
    bias = jnp.repeat(bias, R, axis=0)                            # 'b h i j -> (b x) h i j'
    dots = dots + bias

    pm = (mf[:, None, :, None] * mf[:, None, None, :]) > 0
    dots = jnp.where(pm, dots, -MASK_FILL)

    attn = jax.nn.softmax(dots, axis=-1)
    out = jnp.einsum('bhij,bhjd->bhid', attn, v, precision=hp)
    out = out.transpose(0, 2, 1, 3).reshape(B * R, C, INNER)

    gates = jax.nn.sigmoid(jnp.einsum('bnd,de->bne', xf, wg, precision=hp) + bg[0])
    out = out * gates
    y = jnp.einsum('bne,ed->bnd', out, wo, precision=hp) + bo[0]
    return y.reshape(B, R, C, D)


# ---- main ----------------------------------------------------------------------
if __name__ == "__main__":
    key = jax.random.PRNGKey(0)
    keys = jax.random.split(key, 12)

    x = jax.random.normal(keys[0], (B, R, C, D), dtype=jnp.float32)
    edges = jax.random.normal(keys[1], (B, C, C, D), dtype=jnp.float32) * 0.1
    mask = jax.random.uniform(keys[2], (B, R, C)) > 0.1   # bool

    params = (
        jnp.ones((1, D), jnp.float32),                                          # ln_w
        jnp.zeros((1, D), jnp.float32),                                         # ln_b
        jax.random.normal(keys[3], (D, INNER), jnp.float32) * 0.1,              # Wq
        jax.random.normal(keys[4], (D, 2 * INNER), jnp.float32) * 0.1,          # Wkv
        jax.random.normal(keys[5], (D, INNER), jnp.float32) * 0.1,              # Wg
        jax.random.normal(keys[6], (1, INNER), jnp.float32) * 0.1,              # bg
        jax.random.normal(keys[7], (INNER, D), jnp.float32) * 0.1,              # Wo
        jax.random.normal(keys[8], (1, D), jnp.float32) * 0.1,                  # bo
        jax.random.normal(keys[9], (HEADS, D), jnp.float32) * 0.1,              # We
    )

    y_kernel = jax.block_until_ready(axial_attention_forward(x, edges, mask, params))
    y_ref = jax.block_until_ready(reference_forward(x, edges, mask, params))

    err = float(jnp.max(jnp.abs(y_kernel - y_ref)))
    scale = float(jnp.max(jnp.abs(y_ref)))
    assert y_kernel.shape == (B, R, C, D)
    assert err <= 1e-2 * scale + 1e-4, f"mismatch: max_abs_err={err}, ref_scale={scale}"

    print("KERNEL_OK")
</pallas_src>

<mosaic_0001>
module attributes {stable_mosaic.version = 11 : i64} {
  func.func @kernel(%arg0: i32, %arg1: memref<32x128xf32, #tpu.memory_space<vmem>>, %arg2: memref<1x2x128x128xf32, #tpu.memory_space<vmem>>, %arg3: memref<32x1xf32, #tpu.memory_space<vmem>>, %arg4: memref<32x1xf32, #tpu.memory_space<vmem>>, %arg5: memref<128x32xf32, #tpu.memory_space<vmem>>, %arg6: memref<32x1xf32, #tpu.memory_space<vmem>>, %arg7: memref<32x32xf32, #tpu.memory_space<vmem>>, %arg8: memref<32x1xf32, #tpu.memory_space<vmem>>, %arg9: memref<32x128xf32, #tpu.memory_space<vmem>>) attributes {dimension_semantics = [#tpu.dimension_semantics<parallel>], iteration_bounds = array<i64: 2>, scalar_prefetch = 0 : i64, scratch_operands = 0 : i64, tpu.core_type = #tpu.core_type<tc>, window_params = [{transform_indices = @transform_0, window_bounds = array<i64: 32, 128>}, {transform_indices = @transform_1, window_bounds = array<i64: 1, 2, 128, 128>}, {pipeline_mode = #tpu.pipeline_mode<synchronous>, transform_indices = @transform_2, window_bounds = array<i64: 32, 1>}, {pipeline_mode = #tpu.pipeline_mode<synchronous>, transform_indices = @transform_3, window_bounds = array<i64: 32, 1>}, {pipeline_mode = #tpu.pipeline_mode<synchronous>, transform_indices = @transform_4, window_bounds = array<i64: 128, 32>}, {pipeline_mode = #tpu.pipeline_mode<synchronous>, transform_indices = @transform_5, window_bounds = array<i64: 32, 1>}, {pipeline_mode = #tpu.pipeline_mode<synchronous>, transform_indices = @transform_6, window_bounds = array<i64: 32, 32>}, {pipeline_mode = #tpu.pipeline_mode<synchronous>, transform_indices = @transform_7, window_bounds = array<i64: 32, 1>}, {transform_indices = @transform_8, window_bounds = array<i64: 32, 128>}]} {
    %c0 = arith.constant 0 : index
    %c0_0 = arith.constant 0 : index
    %0 = vector.load %arg1[%c0, %c0_0] : memref<32x128xf32, #tpu.memory_space<vmem>>, vector<32x128xf32>
    %cst = arith.constant dense<0.000000e+00> : vector<128xf32>
    %1 = vector.multi_reduction <add>, %0, %cst [0] : vector<32x128xf32> to vector<128xf32>
    %2 = vector.shape_cast %1 : vector<128xf32> to vector<1x128xf32>
    %cst_1 = arith.constant 3.200000e+01 : f32
    %3 = vector.broadcast %cst_1 : f32 to vector<1x128xf32>
    %4 = arith.divf %2, %3 : vector<1x128xf32>
    %5 = arith.mulf %0, %0 : vector<32x128xf32>
    %cst_2 = arith.constant dense<0.000000e+00> : vector<128xf32>
    %6 = vector.multi_reduction <add>, %5, %cst_2 [0] : vector<32x128xf32> to vector<128xf32>
    %7 = vector.shape_cast %6 : vector<128xf32> to vector<1x128xf32>
    %cst_3 = arith.constant 3.200000e+01 : f32
    %8 = vector.broadcast %cst_3 : f32 to vector<1x128xf32>
    %9 = arith.divf %7, %8 : vector<1x128xf32>
    %10 = arith.mulf %4, %4 : vector<1x128xf32>
    %11 = arith.subf %9, %10 : vector<1x128xf32>
    %12 = vector.broadcast %4 : vector<1x128xf32> to vector<32x128xf32>
    %13 = arith.subf %0, %12 : vector<32x128xf32>
    %cst_4 = arith.constant 9.99999974E-6 : f32
    %14 = vector.broadcast %cst_4 : f32 to vector<1x128xf32>
    %15 = arith.addf %11, %14 : vector<1x128xf32>
    %16 = math.rsqrt %15 : vector<1x128xf32>
    %17 = vector.broadcast %16 : vector<1x128xf32> to vector<32x128xf32>
    %18 = arith.mulf %13, %17 : vector<32x128xf32>
    %c0_5 = arith.constant 0 : index
    %c0_6 = arith.constant 0 : index
    %19 = vector.load %arg3[%c0_5, %c0_6] : memref<32x1xf32, #tpu.memory_space<vmem>>, vector<32x1xf32>
    %20 = vector.broadcast %19 : vector<32x1xf32> to vector<32x128xf32>
    %21 = arith.mulf %18, %20 : vector<32x128xf32>
    %c0_7 = arith.constant 0 : index
    %c0_8 = arith.constant 0 : index
    %22 = vector.load %arg4[%c0_7, %c0_8] : memref<32x1xf32, #tpu.memory_space<vmem>>, vector<32x1xf32>
    %23 = vector.broadcast %22 : vector<32x1xf32> to vector<32x128xf32>
    %24 = arith.addf %21, %23 : vector<32x128xf32>
    %c0_9 = arith.constant 0 : index
    %c0_10 = arith.constant 0 : index
    %25 = vector.load %arg5[%c0_9, %c0_10] : memref<128x32xf32, #tpu.memory_space<vmem>>, vector<128x32xf32>
    %cst_11 = arith.constant dense<0.000000e+00> : vector<128x128xf32>
    %26 = tpu.matmul %25, %24, %cst_11 {dimension_numbers = #tpu.dot_dimension_numbers<[1], [0], [0], [1], [0, 0, 1, 1], [], []>} : vector<128x32xf32>, vector<32x128xf32>, vector<128x128xf32> -> vector<128x128xf32>
    %27 = vector.extract_strided_slice %26 {offsets = [96, 0], sizes = [32, 128], strides = [1, 1]} : vector<128x128xf32> to vector<32x128xf32>
    %c0_12 = arith.constant 0 : index
    %c0_13 = arith.constant 0 : index
    %28 = vector.load %arg6[%c0_12, %c0_13] : memref<32x1xf32, #tpu.memory_space<vmem>>, vector<32x1xf32>
    %29 = vector.broadcast %28 : vector<32x1xf32> to vector<32x128xf32>
    %30 = arith.addf %27, %29 : vector<32x128xf32>
    %31 = arith.negf %30 : vector<32x128xf32>
    %32 = math.exp %31 : vector<32x128xf32>
    %cst_14 = arith.constant 1.000000e+00 : f32
    %33 = vector.broadcast %cst_14 : f32 to vector<32x128xf32>
    %34 = arith.addf %33, %32 : vector<32x128xf32>
    %35 = arith.divf %33, %34 : vector<32x128xf32>
    %36 = vector.extract_strided_slice %26 {offsets = [0, 0], sizes = [16, 128], strides = [1, 1]} : vector<128x128xf32> to vector<16x128xf32>
    %cst_15 = arith.constant 2.500000e-01 : f32
    %37 = vector.broadcast %cst_15 : f32 to vector<16x128xf32>
    %38 = arith.mulf %36, %37 : vector<16x128xf32>
    %39 = vector.extract_strided_slice %26 {offsets = [32, 0], sizes = [16, 128], strides = [1, 1]} : vector<128x128xf32> to vector<16x128xf32>
    %40 = vector.extract_strided_slice %26 {offsets = [64, 0], sizes = [16, 128], strides = [1, 1]} : vector<128x128xf32> to vector<16x128xf32>
    %cst_16 = arith.constant dense<0.000000e+00> : vector<128x128xf32>
    %41 = tpu.matmul %38, %39, %cst_16 {dimension_numbers = #tpu.dot_dimension_numbers<[0], [0], [1], [1], [0, 1, 1, 1], [], []>} : vector<16x128xf32>, vector<16x128xf32>, vector<128x128xf32> -> vector<128x128xf32>
    %c0_17 = arith.constant 0 : index
    %c0_18 = arith.constant 0 : index
    %c0_19 = arith.constant 0 : index
    %c0_20 = arith.constant 0 : index
    %42 = vector.load %arg2[%c0_17, %c0_18, %c0_19, %c0_20] : memref<1x2x128x128xf32, #tpu.memory_space<vmem>>, vector<1x1x128x128xf32>
    %43 = vector.shape_cast %42 : vector<1x1x128x128xf32> to vector<128x128xf32>
    %44 = arith.addf %41, %43 : vector<128x128xf32>
    %cst_21 = arith.constant dense<0xFF800000> : vector<128xf32>
    %45 = vector.multi_reduction <maximumf>, %44, %cst_21 [1] : vector<128x128xf32> to vector<128xf32>
    %46 = vector.shape_cast %45 : vector<128xf32> to vector<128x1xf32>
    %47 = vector.broadcast %46 : vector<128x1xf32> to vector<128x128xf32>
    %48 = arith.subf %44, %47 : vector<128x128xf32>
    %49 = math.exp %48 : vector<128x128xf32>
    %cst_22 = arith.constant dense<0.000000e+00> : vector<128xf32>
    %50 = vector.multi_reduction <add>, %49, %cst_22 [1] : vector<128x128xf32> to vector<128xf32>
    %51 = vector.shape_cast %50 : vector<128xf32> to vector<128x1xf32>
    %52 = tpu.reciprocal %51 {approx = true} : vector<128x1xf32> -> vector<128x1xf32>
    %53 = vector.broadcast %52 : vector<128x1xf32> to vector<128x128xf32>
    %54 = arith.mulf %49, %53 : vector<128x128xf32>
    %cst_23 = arith.constant dense<0.000000e+00> : vector<16x128xf32>
    %55 = tpu.matmul %40, %54, %cst_23 {dimension_numbers = #tpu.dot_dimension_numbers<[1], [1], [0], [0], [0, 0, 1, 0], [], []>} : vector<16x128xf32>, vector<128x128xf32>, vector<16x128xf32> -> vector<16x128xf32>
    %56 = vector.extract_strided_slice %35 {offsets = [0, 0], sizes = [16, 128], strides = [1, 1]} : vector<32x128xf32> to vector<16x128xf32>
    %57 = arith.mulf %55, %56 : vector<16x128xf32>
    %58 = vector.extract_strided_slice %26 {offsets = [16, 0], sizes = [16, 128], strides = [1, 1]} : vector<128x128xf32> to vector<16x128xf32>
    %cst_24 = arith.constant 2.500000e-01 : f32
    %59 = vector.broadcast %cst_24 : f32 to vector<16x128xf32>
    %60 = arith.mulf %58, %59 : vector<16x128xf32>
    %61 = vector.extract_strided_slice %26 {offsets = [48, 0], sizes = [16, 128], strides = [1, 1]} : vector<128x128xf32> to vector<16x128xf32>
    %62 = vector.extract_strided_slice %26 {offsets = [80, 0], sizes = [16, 128], strides = [1, 1]} : vector<128x128xf32> to vector<16x128xf32>
    %cst_25 = arith.constant dense<0.000000e+00> : vector<128x128xf32>
    %63 = tpu.matmul %60, %61, %cst_25 {dimension_numbers = #tpu.dot_dimension_numbers<[0], [0], [1], [1], [0, 1, 1, 1], [], []>} : vector<16x128xf32>, vector<16x128xf32>, vector<128x128xf32> -> vector<128x128xf32>
    %c0_26 = arith.constant 0 : index
    %c1 = arith.constant 1 : index
    %c0_27 = arith.constant 0 : index
    %c0_28 = arith.constant 0 : index
    %64 = vector.load %arg2[%c0_26, %c1, %c0_27, %c0_28] : memref<1x2x128x128xf32, #tpu.memory_space<vmem>>, vector<1x1x128x128xf32>
    %65 = vector.shape_cast %64 : vector<1x1x128x128xf32> to vector<128x128xf32>
    %66 = arith.addf %63, %65 : vector<128x128xf32>
    %cst_29 = arith.constant dense<0xFF800000> : vector<128xf32>
    %67 = vector.multi_reduction <maximumf>, %66, %cst_29 [1] : vector<128x128xf32> to vector<128xf32>
    %68 = vector.shape_cast %67 : vector<128xf32> to vector<128x1xf32>
    %69 = vector.broadcast %68 : vector<128x1xf32> to vector<128x128xf32>
    %70 = arith.subf %66, %69 : vector<128x128xf32>
    %71 = math.exp %70 : vector<128x128xf32>
    %cst_30 = arith.constant dense<0.000000e+00> : vector<128xf32>
    %72 = vector.multi_reduction <add>, %71, %cst_30 [1] : vector<128x128xf32> to vector<128xf32>
    %73 = vector.shape_cast %72 : vector<128xf32> to vector<128x1xf32>
    %74 = tpu.reciprocal %73 {approx = true} : vector<128x1xf32> -> vector<128x1xf32>
    %75 = vector.broadcast %74 : vector<128x1xf32> to vector<128x128xf32>
    %76 = arith.mulf %71, %75 : vector<128x128xf32>
    %cst_31 = arith.constant dense<0.000000e+00> : vector<16x128xf32>
    %77 = tpu.matmul %62, %76, %cst_31 {dimension_numbers = #tpu.dot_dimension_numbers<[1], [1], [0], [0], [0, 0, 1, 0], [], []>} : vector<16x128xf32>, vector<128x128xf32>, vector<16x128xf32> -> vector<16x128xf32>
    %78 = vector.extract_strided_slice %35 {offsets = [16, 0], sizes = [16, 128], strides = [1, 1]} : vector<32x128xf32> to vector<16x128xf32>
    %79 = arith.mulf %77, %78 : vector<16x128xf32>
    %80 = tpu.concatenate %57, %79 in 0 : vector<16x128xf32>, vector<16x128xf32> -> vector<32x128xf32>
    %c0_32 = arith.constant 0 : index
    %c0_33 = arith.constant 0 : index
    %81 = vector.load %arg7[%c0_32, %c0_33] : memref<32x32xf32, #tpu.memory_space<vmem>>, vector<32x32xf32>
    %cst_34 = arith.constant dense<0.000000e+00> : vector<32x128xf32>
    %82 = tpu.matmul %81, %80, %cst_34 {dimension_numbers = #tpu.dot_dimension_numbers<[1], [0], [0], [1], [0, 0, 1, 1], [], []>} : vector<32x32xf32>, vector<32x128xf32>, vector<32x128xf32> -> vector<32x128xf32>
    %c0_35 = arith.constant 0 : index
    %c0_36 = arith.constant 0 : index
    %83 = vector.load %arg8[%c0_35, %c0_36] : memref<32x1xf32, #tpu.memory_space<vmem>>, vector<32x1xf32>
    %84 = vector.broadcast %83 : vector<32x1xf32> to vector<32x128xf32>
    %85 = arith.addf %82, %84 : vector<32x128xf32>
    %c0_37 = arith.constant 0 : index
    %c0_38 = arith.constant 0 : index
    %86 = vector.load %arg9[%c0_37, %c0_38] : memref<32x128xf32, #tpu.memory_space<vmem>>, vector<32x128xf32>
    tpu.vector_store %arg9[%c0_37, %c0_38], %85 {strides = array<i32>} : memref<32x128xf32, #tpu.memory_space<vmem>>, vector<32x128xf32>,
    return
  }
  func.func @transform_0(%arg0: i32) -> (i32, i32) {
    %c0_i32 = arith.constant 0 : i32
    %c0_i32_0 = arith.constant 0 : i32
    return %c0_i32, %arg0 : i32, i32
  }
  func.func @transform_1(%arg0: i32) -> (i32, i32, i32, i32) {
    %c0_i32 = arith.constant 0 : i32
    %c0_i32_0 = arith.constant 0 : i32
    %c0_i32_1 = arith.constant 0 : i32
    %c0_i32_2 = arith.constant 0 : i32
    return %arg0, %c0_i32, %c0_i32_0, %c0_i32_1 : i32, i32, i32, i32
  }
  func.func @transform_2(%arg0: i32) -> (i32, i32) {
    %c0_i32 = arith.constant 0 : i32
    %c0_i32_0 = arith.constant 0 : i32
    %c0_i32_1 = arith.constant 0 : i32
    return %c0_i32, %c0_i32_0 : i32, i32
  }
  func.func @transform_3(%arg0: i32) -> (i32, i32) {
    %c0_i32 = arith.constant 0 : i32
    %c0_i32_0 = arith.constant 0 : i32
    %c0_i32_1 = arith.constant 0 : i32
    return %c0_i32, %c0_i32_0 : i32, i32
  }
  func.func @transform_4(%arg0: i32) -> (i32, i32) {
    %c0_i32 = arith.constant 0 : i32
    %c0_i32_0 = arith.constant 0 : i32
    %c0_i32_1 = arith.constant 0 : i32
    return %c0_i32, %c0_i32_0 : i32, i32
  }
  func.func @transform_5(%arg0: i32) -> (i32, i32) {
    %c0_i32 = arith.constant 0 : i32
    %c0_i32_0 = arith.constant 0 : i32
    %c0_i32_1 = arith.constant 0 : i32
    return %c0_i32, %c0_i32_0 : i32, i32
  }
  func.func @transform_6(%arg0: i32) -> (i32, i32) {
    %c0_i32 = arith.constant 0 : i32
    %c0_i32_0 = arith.constant 0 : i32
    %c0_i32_1 = arith.constant 0 : i32
    return %c0_i32, %c0_i32_0 : i32, i32
  }
  func.func @transform_7(%arg0: i32) -> (i32, i32) {
    %c0_i32 = arith.constant 0 : i32
    %c0_i32_0 = arith.constant 0 : i32
    %c0_i32_1 = arith.constant 0 : i32
    return %c0_i32, %c0_i32_0 : i32, i32
  }
  func.func @transform_8(%arg0: i32) -> (i32, i32) {
    %c0_i32 = arith.constant 0 : i32
    %c0_i32_0 = arith.constant 0 : i32
    return %c0_i32, %arg0 : i32, i32
  }
}

</mosaic_0001>

<bundles_post_ra>
// kernel: tpu_custom_call.1
= control target key start
LH: loop header
LB: loop body
LE: loop exit
PB: predicated region body
PF: predicated region fallthrough
CT: control target
= control target key end

     0   :  { %s3349_s0 = inlined_call_operand.vmem [shape: f32[32,256], index: 0, kind: input, shape index: {}]   ;;  %s3350_s1 = inlined_call_operand.hbm [shape: f32[2,2,128,128], index: 1, kind: input, shape index: {}]   ;;  %s3351_s2 = inlined_call_operand.vmem [shape: f32[32,1], index: 2, kind: input, shape index: {}]   ;;  %s3352_s3 = inlined_call_operand.vmem [shape: f32[32,1], index: 3, kind: input, shape index: {}]   ;;  %s3353_s4 = inlined_call_operand.vmem [shape: f32[128,32], index: 4, kind: input, shape index: {}]   ;;  %s3354_s5 = inlined_call_operand.vmem [shape: f32[32,1], index: 5, kind: input, shape index: {}]   ;;  %s3355_s6 = inlined_call_operand.vmem [shape: f32[32,32], index: 6, kind: input, shape index: {}]   ;;  %s3356_s7 = inlined_call_operand.vmem [shape: f32[32,1], index: 7, kind: input, shape index: {}]   ;;  %s3357_s8 = inlined_call_operand.hbm [shape: f32[32,256], index: 8, kind: output, shape index: {}]  }
   0x1   :  { %3360 = sst [smem:[#allocation9_spill]] %s3349_s0 }
   0x2   :  { %13 = vsyncpa [#allocation4], 0 }
   0x3   :  { %15 = vsyncpa [#allocation4 + $0x1], 0 }
   0x4   :  { %16 = vsyncpa [#allocation5], 0 }
   0x5   :  { %18 = vsyncpa [#allocation5 + $0x1], 0  ;;  %s2710_s27 = smov 0   ;;  %s2712_s28 = smov 0  }
   0x6   :  { %s2714_s29 = smov 0   ;;  %s2716_s30 = smov 0  }
   0x7 LB: > { %s2731_s9 = sadd.s32 4294967295, %s2655_s30   ;;  %s1912_s10 = sadd.s32 4294967294, %s2655_s30   ;;  %s2655_s30 = sphi %s2716_s30, %s3372_s30   ;;  %s2651_s29 = sphi %s2714_s29, %s3371_s29   ;;  %s2647_s28 = sphi %s2712_s28, %s3370_s28   ;;  %s2643_s27 = sphi %s2710_s27, %s3369_s27  }
   0x8   : > { %s2735_s11 = sadd.s32 1, %s2655_s30   ;;  %s31_s12 = sadd.s32 1, %s2651_s29 }
   0x9   : > { %s28_s13 = ssub.s32 %s2655_s30, %s2735_s11  ;;  %p38_p0 = scmp.ne.s32.totalorder %s2651_s29, %s2647_s28 }
   0xa   : > { %p29_p1 = scmp.eq.s32.totalorder %s28_s13, 0  ;;  %p39_p2 = scmp.eq.s32.totalorder %s2655_s30, 0 }
   0xb   : > { %p70_p3 = scmp.ne.s32.totalorder %s2647_s28, %s2643_s27  ;;  %p71_p4 = scmp.eq.s32.totalorder %s2731_s9, 0 }
   0xc   : > { %s2747_s14 = scalar_select %p29_p1, %s2651_s29, %s31_s12  }
   0xd   : > { %p2749_p5 = por %p39_p2, %p38_p0  ;;  %p2753_p6 = por %p71_p4, %p70_p3 }
   0xe   : > { %p220_p7 = scmp.eq.s32.totalorder %s2731_s9, 1  ;;  %p226_p8 = scmp.eq.s32.totalorder %s1912_s10, 1 }
   0xf   : > { %p3358_p11 = scmp.ge.s32.totalorder %s2655_s30, 2 }
  0x10   : > { %p2758_p9 = por %p220_p7, %p38_p0  ;;  %p2762_p10 = por %p226_p8, %p70_p3 }
  0x11   : > { %260 = sbr.rel (%p3358_p11) target bundleno = 62 (0x3e), region = 40 }
  0x12   : > { %s3363_s17 = scalar_select %p2758_p9, 1, 0 }
  0x13   : > { %s3364_s18 = scalar_select %p2762_p10, 1, 0 }
  0x18   : > { %263 = sbr.rel (!%p2749_p5) target bundleno = 36 (0x24), region = 44  ;;  %s265_s19 = sand.u32 (%p2749_p5), 1, %s2651_s29  }
  0x19   : > { %s1916_s20 = sshll.u32 (%p2749_p5), %s2655_s30, 3  ;;  %s1915_s21 = sshll.u32 (%p2749_p5), %s265_s19, 5 }
  0x1a   : > { %s3365_s0 = sld [smem:[#allocation9_spill]] (%p2749_p5)  ;;  %s267_s25 = scalar_lea.vmem (%p2749_p5), [#allocation2], %s1915_s21 }
  0x20   : > { %s269_s24 = scalar_lea.vmem %s3365_s0, %s1916_s20 }
  0x21   : > { %v303_v0 = vld [vmem:[%s269_s24] sm:$0xff]  ;;  %v305_v1 = vld [vmem:[%s269_s24 + $0x10] sm:$0xff] }
  0x22   : > { %v307_v2 = vld [vmem:[%s269_s24 + $0x20] sm:$0xff]  ;;  %304 = vst [vmem:[%s267_s25] sm:$0xff] %v303_v0  ;;  %306 = vst [vmem:[%s267_s25 + $0x8] sm:$0xff] %v305_v1  ;;  %v309_v3 = vld [vmem:[%s269_s24 + $0x30] sm:$0xff] }
  0x23   : > { %308 = vst [vmem:[%s267_s25 + $0x10] sm:$0xff] %v307_v2  ;;  %310 = vst [vmem:[%s267_s25 + $0x18] sm:$0xff] %v309_v3 }
  0x24 PF: > { %s317_s26 = sand.u32 1, %s2651_s29   ;;  %s2000_s10 = sshll.u32 %s2655_s30, 12 }
  0x25   : > { %s1917_s12 = sshll.u32 %s317_s26, 8  ;;  %s2781_s20 = scalar_lea.hbm %s3350_s1, %s2000_s10 }
  0x26   : > { %s321_s21 = scalar_lea.vmem [#allocation3], %s1917_s12  ;;  %s2785_s23 = scalar_lea.sflag [#allocation4], %s317_s26 }
  0x27   : > { %s328_s22 = sshll.u32 %s321_s21, 4  ;;  %s2561_s24 = scalar_lea.hbm %s2781_s20, 4096  ;;  %s2783_s22 = int_to_ptr.vmem [resolvable:$true] %s328_s22 }
  0x28   : > { %p2562_p12 = scmp.ne.s32.totalorder %s2781_s20, %s2561_s24  ;;  %s2565_s10 = scalar_lea.hbm %s3350_s1, 8192 }
  0x29   : > { %p2566_p1 = scmp.lt.u32.totalorder %s2781_s20, %s3350_s1  ;;  %p2567_p2 = scmp.lt.u32.totalorder %s2565_s10, %s2561_s24 }
  0x2a   : > { %p2563_p13 = pnand %p2562_p12, %p2749_p5  ;;  %p2569_p4 = scmp.lt.u32.totalorder %s2561_s24, %s2781_s20 }
  0x2b   : > { %p2568_p3 = por %p2567_p2, %p2566_p1 }
  0x2c   : > { %p2564_p0 = pneg %p2563_p13 }
  0x2d   : > { %p2570_p7 = por %p2569_p4, %p2568_p3 }
  0x2f   : > { %p2571_p8 = pnand %p2570_p7, %p2564_p0 }
  0x31   : > { %2574 = shalt.err (!%p2571_p8)
}
  0x32   : > { %s2575_s26 = scalar_lea.vmem %s2783_s22, 4096  ;;  %s2657_s0 = smov [#allocation3]  }
  0x33   : > { %p2576_p12 = scmp.ne.s32.totalorder %s2783_s22, %s2575_s26  ;;  %s2579_s12 = sshll.u32 %s2657_s0, 4  ;;  %s2580_s12 = int_to_ptr.vmem [resolvable:$false] %s2579_s12 }
  0x34   : > { %s2581_s21 = scalar_lea.vmem %s2580_s12, 8192  ;;  %p2582_p10 = scmp.lt.s32.totalorder %s2783_s22, %s2580_s12 }
  0x35   : > { %p2577_p13 = pnand %p2576_p12, %p2749_p5  ;;  %p2583_p9 = scmp.lt.s32.totalorder %s2581_s21, %s2575_s26 }
  0x37   : > { %p2578_p11 = pneg %p2577_p13  ;;  %p2584_p1 = por %p2583_p9, %p2582_p10 }
  0x39   : > { %p2585_p2 = pnand %p2584_p1, %p2578_p11 }
  0x3b   : > { %2588 = shalt.err (!%p2585_p2)
}
  0x3c   : > { %s2658_s24 = smov 128   ;;  %s2659_s25 = smov 8  }
  0x3d   : > { %2365 = dma.hbm_to_vmem [thread:$0]  (%p2749_p5), %s2781_s20, 4096, %s2783_s22, %s2785_s23, %s2658_s24, %s2658_s24, %s2659_s25  }
  0x3e PF: > { %p1920_p0 = scmp.ge.s32.totalorder %s2655_s30, 1  ;;  %p336_p3 = scmp.lt.s32.totalorder %s2655_s30, 3 }
  0x40   : > { %p337_p4 = pnand %p1920_p0, %p336_p3 }
  0x41   : > { %s2812_s10 = sand.u32 (!%p337_p4), 1, %s2647_s28  }
  0x42   : > { %340 = sbr.rel (%p337_p4) target bundleno = 1631 (0x65f), region = 86  ;;  %s1921_s13 = sshll.u32 (!%p337_p4), %s2812_s10, 5 }
  0x43   : > { %s1922_s19 = sshll.u32 (!%p337_p4), %s2812_s10, 8  ;;  %s2818_s15 = scalar_lea.vmem (!%p337_p4), [#allocation2], %s1921_s13 }
  0x44   : > { %s350_s20 = scalar_lea.sflag (!%p337_p4), [#allocation4], %s2812_s10  ;;  %s2821_s22 = scalar_lea.vmem (!%p337_p4), [#allocation3], %s1922_s19 }
  0x49   : > { %2634 = dma.done.wait (%p2753_p6), %s350_s20, 4096  }
  0x4a   : > { %2636 = vsyncadd (%p2753_p6), %s350_s20, 4294963200  ;;  %v2660_v4 = vmov 0   ;;  %v459_v5 = vld [vmem:[%s3352_s3] sm:$0xff]  ;;  %v460_v7 = vld [vmem:[%s3352_s3 + $0x8] sm:$0xff]  ;;  %vm503_vm0 = vcmask 261120   ;;  %vm799_vm1 = vcmask 130048  }
  0x4b   : > { %2414 = vset.pattern.permute.xlu1 %v2660_v4  ;;  %2413 = vset.pattern.permute.xlu0 %v2660_v4  ;;  %v431_v6 = vld [vmem:[%s3351_s2] sm:$0xff]  ;;  %v432_v8 = vld [vmem:[%s3351_s2 + $0x8] sm:$0xff]  ;;  %v434_v9 = vld [vmem:[%s3351_s2 + $0x18] sm:$0xff]  ;;  %s1997_s16 = sshll.u32 %s2731_s9, 7  ;;  %s1809_s9 = scalar_lea.sflag [#allocation5], %s2812_s10 }
  0x4c   : > { %465 = vperm.xlu1 %2414, %v459_v5   ;;  %437 = vperm.xlu0 %2413, %v431_v6   ;;  %v433_v10 = vld [vmem:[%s3351_s2 + $0x10] sm:$0xff]  ;;  %v462_v11 = vld [vmem:[%s3352_s3 + $0x18] sm:$0xff]  ;;  %v487_v13 = vld [vmem:[%s3353_s4] sm:$0xff]  ;;  %p3366_p6 = scmp.ne.s32.totalorder %s3363_s17, 0  ;;  %s2661_s20 = smov [#allocation6]  }
  0x4d   : > { %v461_v12 = vld [vmem:[%s3352_s3 + $0x10] sm:$0xff]  ;;  %2109 = vmatprep.mubr.msk.f32.mxu0 %vm503_vm0, %v487_v13  ;;  %v390_v14 = vld [vmem:[%s2818_s15] sm:$0xff]  ;;  %v391_v15 = vld [vmem:[%s2818_s15 + $0x8] sm:$0xff]  ;;  %s2593_s23 = sshll.u32 %s2661_s20, 4  ;;  %s2594_s23 = int_to_ptr.vmem [resolvable:$false] %s2593_s23 }
  0x4e   : > { %v394_v16 = vadd.f32 %v391_v15, %v390_v14  ;;  %v405_v17 = vmul.f32 %v390_v14, %v390_v14  ;;  %v406_v18 = vmul.f32 %v391_v15, %v391_v15  ;;  %v392_v19 = vld [vmem:[%s2818_s15 + $0x10] sm:$0xff]  ;;  %v393_v23 = vld [vmem:[%s2818_s15 + $0x18] sm:$0xff]  ;;  %s3305_s15 = scalar_lea.hbm %s3357_s8, %s1997_s16  ;;  %s2595_s26 = scalar_lea.vmem %s2594_s23, 1024 }
  0x4f   : > { %v407_v21 = vmul.f32 %v392_v19, %v392_v19  ;;  %v408_v25 = vmul.f32 %v393_v23, %v393_v23  ;;  %v493_v13 = vld [vmem:[%s3353_s4 + $0x30] sm:$0xff] }
  0x50   : > { %470 = vperm.xlu1 %2414, %v460_v7   ;;  %442 = vperm.xlu0 %2413, %v432_v8   ;;  %v395_v20 = vadd.f32 %v394_v16, %v392_v19  ;;  %v409_v22 = vadd.f32 %v406_v18, %v405_v17  ;;  %v488_v8 = vld [vmem:[%s3353_s4 + $0x8] sm:$0xff]  ;;  %v501_v17 = vld [vmem:[%s3353_s4 + $0x70] sm:$0xff]  ;;  %v495_v18 = vld [vmem:[%s3353_s4 + $0x40] sm:$0xff] }
  0x51   : > { %v500_v16 = vld [vmem:[%s3353_s4 + $0x68] sm:$0xff] }
  0x52   : > { %v396_v24 = vadd.f32 %v395_v20, %v393_v23  ;;  %v410_v26 = vadd.f32 %v409_v22, %v407_v21 }
  0x54   : > { %452 = vperm.xlu1 %2414, %v434_v9   ;;  %447 = vperm.xlu0 %2413, %v433_v10   ;;  %v397_v27 = vrot.slane %v396_v24, 4  ;;  %v411_v28 = vadd.f32 %v410_v26, %v408_v25  ;;  %v489_v9 = vld [vmem:[%s3353_s4 + $0x10] sm:$0xff]  ;;  %v490_v10 = vld [vmem:[%s3353_s4 + $0x18] sm:$0xff] }
  0x55   : > { %v497_v26 = vld [vmem:[%s3353_s4 + $0x50] sm:$0xff] }
  0x56   : > { %v398_v29 = vadd.f32 %v397_v27, %v396_v24  ;;  %v412_v30 = vrot.slane %v411_v28, 4  ;;  %v496_v24 = vld [vmem:[%s3353_s4 + $0x48] sm:$0xff] }
  0x58   : > { %480 = vperm.xlu1 %2414, %v462_v11   ;;  %475 = vperm.xlu0 %2413, %v461_v12   ;;  %v399_v31 = vrot.slane %v398_v29, 2  ;;  %v413_v32 = vadd.f32 %v412_v30, %v411_v28  ;;  %v491_v11 = vld [vmem:[%s3353_s4 + $0x20] sm:$0xff]  ;;  %v492_v12 = vld [vmem:[%s3353_s4 + $0x28] sm:$0xff]  ;;  %v498_v30 = vld [vmem:[%s3353_s4 + $0x58] sm:$0xff] }
  0x5a   : > { %v400_v33 = vadd.f32 %v399_v31, %v398_v29  ;;  %v414_v34 = vrot.slane %v413_v32, 2 }
  0x5c   : > { %v401_v35 = vrot.slane %v400_v33, 1  ;;  %v415_v36 = vadd.f32 %v414_v34, %v413_v32 }
  0x5e   : > { %v402_v37 = vadd.f32 %v401_v35, %v400_v33  ;;  %v416_v38 = vrot.slane %v415_v36, 1 }
  0x60   : > { %v404_v39 = vmul.f32 0.03125, %v402_v37  ;;  %v417_v40 = vadd.f32 %v416_v38, %v415_v36 }
  0x62   : > { %v418_v41 = vmul.f32 0.03125, %v417_v40  ;;  %v419_v42 = vmul.f32 %v404_v39, %v404_v39  ;;  %v421_v45 = vsub.f32 %v390_v14, %v404_v39  ;;  %v422_v47 = vsub.f32 %v391_v15, %v404_v39  ;;  %v494_v14 = vld [vmem:[%s3353_s4 + $0x38] sm:$0xff]  ;;  %v499_v15 = vld [vmem:[%s3353_s4 + $0x60] sm:$0xff] }
  0x63   : > { %v424_v53 = vsub.f32 %v393_v23, %v404_v39  ;;  %v423_v54 = vsub.f32 %v392_v19, %v404_v39  ;;  %2127 = vmatprep.mubr.msk.f32.mxu1 %vm503_vm0, %v499_v15  ;;  %v502_v19 = vld [vmem:[%s3353_s4 + $0x78] sm:$0xff] }
  0x64   : > { %v420_v43 = vsub.f32 %v418_v41, %v419_v42 }
  0x66   : > { %v425_v44 = vadd.f32 1e-05, %v420_v43 }
  0x68   : > { %2415 = vrsqrt.f32 %v425_v44 }
  0x72   : > { %v2416_v46 = vpop.eup %2415 }
  0x73   : > { %v427_v48 = vmul.f32 %v2416_v46, %v421_v45  ;;  %v428_v51 = vmul.f32 %v2416_v46, %v422_v47  ;;  %v430_v60 = vmul.f32 %v2416_v46, %v424_v53  ;;  %v429_v61 = vmul.f32 %v2416_v46, %v423_v54 }
  0xcb   : > { %v466_v49 = vpop.permute.xlu1 %465  ;;  %v438_v50 = vpop.permute.xlu0 %437 }
  0xcc   : > { %v455_v52 = vmul.f32 %v438_v50, %v427_v48 }
  0xce   : > { %v483_v58 = vadd.f32 %v466_v49, %v455_v52 }
  0xcf   : > { %v471_v55 = vpop.permute.xlu1 %470  ;;  %v443_v56 = vpop.permute.xlu0 %442 }
  0xd0   : > { %v456_v57 = vmul.f32 %v443_v56, %v428_v51 }
  0xd2   : > { %v484_v59 = vadd.f32 %v471_v55, %v456_v57 }
  0xd3   : > { %v453_v62 = vpop.permute.xlu1 %452  ;;  %v448_v63 = vpop.permute.xlu0 %447 }
  0xd4   : > { %v2273_v0 = vpack.c.bf16 %v484_v59, %v483_v58  ;;  %v458_v1 = vmul.f32 %v453_v62, %v430_v60  ;;  %v457_v2 = vmul.f32 %v448_v63, %v429_v61 }
  0xd6   : > { %2274 = vmatprep.subr.bf16.mxu0 %v2273_v0  ;;  %2361 = vmatprep.subr.bf16.mxu1 %v2273_v0 }
  0xd7   : > { %v481_v3 = vpop.permute.xlu1 %480  ;;  %v476_v4 = vpop.permute.xlu0 %475  ;;  %2276 = vmatpush3.bf16.msra.mxu0 %v2273_v0  ;;  %2363 = vmatpush3.bf16.msra.mxu1 %v2273_v0 }
  0xd8   : > { %v486_v5 = vadd.f32 %v481_v3, %v458_v1  ;;  %v485_v6 = vadd.f32 %v476_v4, %v457_v2 }
  0xda   : > { %v2277_v7 = vpack.c.bf16 %v486_v5, %v485_v6 }
  0xdc   : > { %2278 = vmatprep.subr.bf16.mxu0 %v2277_v7  ;;  %2362 = vmatprep.subr.bf16.mxu1 %v2277_v7 }
  0xdd   : > { %2280 = vmatpush3.bf16.msra.mxu0 %v2277_v7  ;;  %2364 = vmatpush3.bf16.msra.mxu1 %v2277_v7 }
  0xe0   : > { %2110 = vmatmul.mubr.msk.f32.vlgmr.msra.gmra.mrb[0].mxu0 %vm503_vm0, %v488_v8  ;;  %2128 = vmatmul.mubr.msk.f32.vlgmr.msra.gmra.mrb[0].mxu1 %vm503_vm0, %v500_v16 }
  0xe1   : > { %2112 = vmatprep.mubr.msk.f32.mxu0 %vm503_vm0, %v489_v9  ;;  %2130 = vmatprep.mubr.msk.f32.mxu1 %vm503_vm0, %v501_v17 }
  0xe4   : > { %2113 = vmatmul.mubr.msk.f32.gmra.mrb[2].mxu0 %vm503_vm0, %v490_v10  ;;  %2131 = vmatmul.mubr.msk.f32.gmra.mrb[2].mxu1 %vm503_vm0, %v502_v19  ;;  %v1961_v19 = vld [vmem:[%s2821_s22 + $0x88] sm:$0xff] }
  0xe5   : > { %2115 = vmatprep.mubr.msk.f32.mxu0 %vm503_vm0, %v491_v11 }
  0xe8   : > { %2116 = vmatmul.mubr.msk.f32.gmra.mrb[4].mxu0 %vm503_vm0, %v492_v12 }
  0xe9   : > { %2118 = vmatprep.mubr.msk.f32.mxu0 %vm503_vm0, %v493_v13  ;;  %v752_v13 = vld [vmem:[%s2821_s22 + $0x8] sm:$0xff] }
  0xec   : > { %2119 = vmatmul.mubr.msk.f32.gmra.mrb[6].mxu0 %vm503_vm0, %v494_v14  ;;  %v751_v14 = vld [vmem:[%s2821_s22] sm:$0xff] }
  0xed   : > { %2121 = vmatprep.mubr.msk.f32.mxu0 %vm503_vm0, %v495_v18 }
  0xf0   : > { %2122 = vmatmul.mubr.msk.f32.gmra.mrb[8].mxu0 %vm503_vm0, %v496_v24  ;;  %v753_v24 = vld [vmem:[%s2821_s22 + $0x10] sm:$0xff] }
  0xf1   : > { %2124 = vmatprep.mubr.msk.f32.mxu0 %vm503_vm0, %v497_v26  ;;  %v754_v26 = vld [vmem:[%s2821_s22 + $0x18] sm:$0xff] }
  0xf4   : > { %2125 = vmatmul.mubr.msk.f32.gmra.mrb[10].mxu0 %vm503_vm0, %v498_v30  ;;  %v1962_v30 = vld [vmem:[%s2821_s22 + $0x90] sm:$0xff] }
 0x1b3   : > { %v2111_v20 = vpop.f32.mrb[0].mxu0  ;;  %v2919_v37 = vpop.f32.mrb[0].mxu1 }
 0x1b4   : > { %v618_v21 = vpop.f32.mrb[1].mxu0  ;;  %v750_v27 = vmul.f32 0.25, %v2111_v20  ;;  %v2921_v38 = vpop.f32.mrb[1].mxu1 }
 0x1b5   : > { %v749_v22 = vmul.f32 0.25, %v618_v21 }
 0x1b7   : > { %767 = vxpose.xlu0.b32.start [1/2] (short) %v749_v22, 128  ;;  %v2114_v23 = vpop.f32.mrb[2].mxu0  ;;  %v2923_v39 = vpop.f32.mrb[2].mxu1 }
 0x1b8   : > { %v628_v25 = vpop.f32.mrb[3].mxu0  ;;  %v1215_v32 = vmul.f32 0.25, %v2114_v23  ;;  %v2925_v40 = vpop.f32.mrb[3].mxu1  ;;  %v1960_v23 = vld [vmem:[%s2821_s22 + $0x80] sm:$0xff] }
 0x1b9   : > { %v1214_v28 = vmul.f32 0.25, %v628_v25 }
 0x1bb   : > { %768 = vxpose.xlu0.b32.end [2/2] (short) %v750_v27, 128  ;;  %1233 = vxpose.xlu1.b32.start [1/2] (short) %v1214_v28, 128  ;;  %v2117_v29 = vpop.f32.mrb[4].mxu0 }
 0x1bc   : > { %v638_v31 = vpop.f32.mrb[5].mxu0 }
 0x1bd   : > { %v2281_v33 = vpack.c.bf16 %v2117_v29, %v638_v31 }
 0x1bf   : > { %1234 = vxpose.xlu1.b32.end [2/2] (short) %v1215_v32, 128  ;;  %v2120_v34 = vpop.f32.mrb[6].mxu0  ;;  %2282 = vmatprep.subr.bf16.mxu1 %v2281_v33 }
 0x1c0   : > { %v648_v35 = vpop.f32.mrb[7].mxu0  ;;  %2284 = vmatpush3.bf16.msra.mxu1 %v2281_v33  ;;  %v1963_v33 = vld [vmem:[%s2821_s22 + $0x98] sm:$0xff] }
 0x1c1   : > { %v2317_v36 = vpack.c.bf16 %v2120_v34, %v648_v35 }
 0x1c3   : > { %2318 = vmatprep.subr.bf16.mxu0 %v2317_v36  ;;  %v2959_v9 = vpop.f32.mrb[8].mxu0 }
 0x1c4   : > { %2320 = vmatpush3.bf16.msra.mxu0 %v2317_v36  ;;  %v658_v10 = vpop.f32.mrb[9].mxu0  ;;  %v755_v36 = vld [vmem:[%s2821_s22 + $0x20] sm:$0xff] }
 0x1c7   : > { %v2961_v11 = vpop.f32.mrb[10].mxu0 }
 0x1c8   : > { %v668_v12 = vpop.f32.mrb[11].mxu0 }
 0x237   : > { %v783_v41 = vpop.trf.xlu0 }
 0x238   : > { %2137 = vmatprep.mubr.msk.f32.mxu1 %vm799_vm1, %v783_v41 }
 0x23b   : > { %v784_v42 = vpop.trf.xlu0  ;;  %v1249_v43 = vpop.trf.xlu1 }
 0x23c   : > { %2138 = vmatmul.mubr.msk.f32.vlgmr.msra.gmra.mrb[4].mxu1 %vm799_vm1, %v784_v42  ;;  %2200 = vmatprep.mubr.msk.f32.mxu0 %vm799_vm1, %v1249_v43  ;;  %v756_v43 = vld [vmem:[%s2821_s22 + $0x28] sm:$0xff] }
 0x23f   : > { %v785_v44 = vpop.trf.xlu0  ;;  %v1250_v45 = vpop.trf.xlu1 }
 0x240   : > { %2201 = vmatmul.mubr.msk.f32.vlgmr.msra.gmra.mrb[12].mxu0 %vm799_vm1, %v1250_v45  ;;  %2140 = vmatprep.mubr.msk.f32.mxu1 %vm799_vm1, %v785_v44 }
 0x243   : > { %v786_v46 = vpop.trf.xlu0  ;;  %v1251_v47 = vpop.trf.xlu1 }
 0x244   : > { %2141 = vmatmul.mubr.msk.f32.gmra.mrb[6].mxu1 %vm799_vm1, %v786_v46  ;;  %2203 = vmatprep.mubr.msk.f32.mxu0 %vm799_vm1, %v1251_v47  ;;  %v1964_v46 = vld [vmem:[%s2821_s22 + $0xa0] sm:$0xff] }
 0x247   : > { %v787_v48 = vpop.trf.xlu0  ;;  %v1252_v49 = vpop.trf.xlu1 }
 0x248   : > { %2204 = vmatmul.mubr.msk.f32.gmra.mrb[14].mxu0 %vm799_vm1, %v1252_v49  ;;  %2143 = vmatprep.mubr.msk.f32.mxu1 %vm799_vm1, %v787_v48  ;;  %v1965_v49 = vld [vmem:[%s2821_s22 + $0xa8] sm:$0xff] }
 0x24b   : > { %v788_v50 = vpop.trf.xlu0  ;;  %v1253_v51 = vpop.trf.xlu1 }
 0x24c   : > { %2144 = vmatmul.mubr.msk.f32.gmra.mrb[8].mxu1 %vm799_vm1, %v788_v50  ;;  %2206 = vmatprep.mubr.msk.f32.mxu0 %vm799_vm1, %v1253_v51 }
 0x24f   : > { %v789_v52 = vpop.trf.xlu0  ;;  %v1254_v53 = vpop.trf.xlu1 }
 0x250   : > { %2207 = vmatmul.mubr.msk.f32.gmra.mrb[16].mxu0 %vm799_vm1, %v1254_v53  ;;  %2146 = vmatprep.mubr.msk.f32.mxu1 %vm799_vm1, %v789_v52  ;;  %v757_v52 = vld [vmem:[%s2821_s22 + $0x30] sm:$0xff] }
 0x253   : > { %v790_v54 = vpop.trf.xlu0  ;;  %v1255_v55 = vpop.trf.xlu1 }
 0x254   : > { %2147 = vmatmul.mubr.msk.f32.gmra.mrb[10].mxu1 %vm799_vm1, %v790_v54  ;;  %2209 = vmatprep.mubr.msk.f32.mxu0 %vm799_vm1, %v1255_v55  ;;  %v758_v55 = vld [vmem:[%s2821_s22 + $0x38] sm:$0xff] }
 0x257   : > { %v791_v56 = vpop.trf.xlu0  ;;  %v1256_v57 = vpop.trf.xlu1 }
 0x258   : > { %2210 = vmatmul.mubr.msk.f32.gmra.mrb[18].mxu0 %vm799_vm1, %v1256_v57  ;;  %2149 = vmatprep.mubr.msk.f32.mxu1 %vm799_vm1, %v791_v56 }
 0x25b   : > { %v792_v58 = vpop.trf.xlu0  ;;  %v1257_v59 = vpop.trf.xlu1 }
 0x25c   : > { %2150 = vmatmul.mubr.msk.f32.gmra.mrb[12].mxu1 %vm799_vm1, %v792_v58  ;;  %2212 = vmatprep.mubr.msk.f32.mxu0 %vm799_vm1, %v1257_v59  ;;  %v1966_v58 = vld [vmem:[%s2821_s22 + $0xb0] sm:$0xff] }
 0x25f   : > { %v793_v60 = vpop.trf.xlu0  ;;  %v1258_v61 = vpop.trf.xlu1 }
 0x260   : > { %2213 = vmatmul.mubr.msk.f32.gmra.mrb[20].mxu0 %vm799_vm1, %v1258_v61  ;;  %2152 = vmatprep.mubr.msk.f32.mxu1 %vm799_vm1, %v793_v60  ;;  %v1967_v61 = vld [vmem:[%s2821_s22 + $0xb8] sm:$0xff] }
 0x263   : > { %v794_v62 = vpop.trf.xlu0  ;;  %v1259_v63 = vpop.trf.xlu1 }
 0x264   : > { %2153 = vmatmul.mubr.msk.f32.gmra.mrb[14].mxu1 %vm799_vm1, %v794_v62  ;;  %2215 = vmatprep.mubr.msk.f32.mxu0 %vm799_vm1, %v1259_v63 }
 0x267   : > { %v795_v0 = vpop.trf.xlu0  ;;  %v1260_v1 = vpop.trf.xlu1 }
 0x268   : > { %2216 = vmatmul.mubr.msk.f32.gmra.mrb[22].mxu0 %vm799_vm1, %v1260_v1  ;;  %2155 = vmatprep.mubr.msk.f32.mxu1 %vm799_vm1, %v795_v0  ;;  %v759_v0 = vld [vmem:[%s2821_s22 + $0x40] sm:$0xff] }
 0x26b   : > { %v796_v2 = vpop.trf.xlu0  ;;  %v1261_v3 = vpop.trf.xlu1 }
 0x26c   : > { %2156 = vmatmul.mubr.msk.f32.gmra.mrb[16].mxu1 %vm799_vm1, %v796_v2  ;;  %2218 = vmatprep.mubr.msk.f32.mxu0 %vm799_vm1, %v1261_v3  ;;  %v760_v3 = vld [vmem:[%s2821_s22 + $0x48] sm:$0xff] }
 0x26f   : > { %v797_v4 = vpop.trf.xlu0  ;;  %v1262_v5 = vpop.trf.xlu1 }
 0x270   : > { %2219 = vmatmul.mubr.msk.f32.gmra.mrb[24].mxu0 %vm799_vm1, %v1262_v5  ;;  %2158 = vmatprep.mubr.msk.f32.mxu1 %vm799_vm1, %v797_v4 }
 0x273   : > { %v798_v6 = vpop.trf.xlu0  ;;  %v1263_v7 = vpop.trf.xlu1 }
 0x274   : > { %2159 = vmatmul.mubr.msk.f32.gmra.mrb[18].mxu1 %vm799_vm1, %v798_v6  ;;  %2221 = vmatprep.mubr.msk.f32.mxu0 %vm799_vm1, %v1263_v7  ;;  %v1968_v6 = vld [vmem:[%s2821_s22 + $0xc0] sm:$0xff] }
 0x275   : > { %2193 = vmatprep.mubr.f32.mxu1 %v658_v10  ;;  %v1969_v10 = vld [vmem:[%s2821_s22 + $0xc8] sm:$0xff] }
 0x277   : > { %v1264_v8 = vpop.trf.xlu1 }
 0x278   : > { %2222 = vmatmul.mubr.msk.f32.gmra.mrb[26].mxu0 %vm799_vm1, %v1264_v8 }
 0x279   : > { %2256 = vmatprep.mubr.f32.mxu0 %v668_v12 }
 0x30f   : > { %v2139_v15 = vpop.f32.mrb[4].mxu1 }
 0x310   : > { %v2965_v16 = vadd.f32 %v2139_v15, %v752_v13  ;;  %v914_v17 = vpop.f32.mrb[5].mxu1 }
 0x311   : > { %v2967_v18 = vadd.f32 %v914_v17, %v751_v14  ;;  %v761_v14 = vld [vmem:[%s2821_s22 + $0x50] sm:$0xff] }
 0x312   : > { %995 = vmax.xlane.f32.xlu1 %v2965_v16 }
 0x313   : > { %993 = vmax.xlane.f32.xlu0 %v2967_v18  ;;  %v2202_v20 = vpop.f32.mrb[12].mxu0 }
 0x314   : > { %v2972_v21 = vadd.f32 %v2202_v20, %v1961_v19  ;;  %v1379_v22 = vpop.f32.mrb[13].mxu0  ;;  %v762_v19 = vld [vmem:[%s2821_s22 + $0x58] sm:$0xff] }
 0x315   : > { %v2978_v28 = vadd.f32 %v1960_v23, %v1379_v22  ;;  %v1970_v23 = vld [vmem:[%s2821_s22 + $0xd0] sm:$0xff] }
 0x317   : > { %v2142_v25 = vpop.f32.mrb[6].mxu1  ;;  %1460 = vmax.xlane.f32.xlu0 %v2972_v21 }
 0x318   : > { %v924_v27 = vpop.f32.mrb[7].mxu1  ;;  %v2983_v31 = vadd.f32 %v2142_v25, %v754_v26  ;;  %v1971_v26 = vld [vmem:[%s2821_s22 + $0xd8] sm:$0xff] }
 0x319   : > { %v2980_v29 = vadd.f32 %v924_v27, %v753_v24 }
 0x31b   : > { %997 = vmax.xlane.f32.xlu1 %v2980_v29  ;;  %v2205_v32 = vpop.f32.mrb[14].mxu0  ;;  %1458 = vmax.xlane.f32.xlu0 %v2978_v28 }
 0x31c   : > { %v1389_v34 = vpop.f32.mrb[15].mxu0  ;;  %v2991_v41 = vadd.f32 %v2205_v32, %v1963_v33  ;;  %v763_v32 = vld [vmem:[%s2821_s22 + $0x60] sm:$0xff] }
 0x31d   : > { %v2988_v35 = vadd.f32 %v1962_v30, %v1389_v34 }
 0x31f   : > { %v2145_v42 = vpop.f32.mrb[8].mxu1  ;;  %1462 = vmax.xlane.f32.xlu1 %v2988_v35  ;;  %999 = vmax.xlane.f32.xlu0 %v2983_v31 }
 0x320   : > { %v934_v44 = vpop.f32.mrb[9].mxu1  ;;  %v2999_v47 = vadd.f32 %v2145_v42, %v756_v43 }
 0x321   : > { %v2996_v45 = vadd.f32 %v934_v44, %v755_v36  ;;  %v764_v36 = vld [vmem:[%s2821_s22 + $0x68] sm:$0xff]  ;;  %v1972_v44 = vld [vmem:[%s2821_s22 + $0xe0] sm:$0xff] }
 0x323   : > { %v2208_v48 = vpop.f32.mrb[16].mxu0  ;;  %1001 = vmax.xlane.f32.xlu1 %v2996_v45  ;;  %1464 = vmax.xlane.f32.xlu0 %v2991_v41 }
 0x324   : > { %v1399_v50 = vpop.f32.mrb[17].mxu0  ;;  %v3007_v53 = vadd.f32 %v2208_v48, %v1965_v49  ;;  %v1973_v49 = vld [vmem:[%s2821_s22 + $0xe8] sm:$0xff] }
 0x325   : > { %v3004_v51 = vadd.f32 %v1964_v46, %v1399_v50 }
 0x327   : > { %v2148_v54 = vpop.f32.mrb[10].mxu1  ;;  %1466 = vmax.xlane.f32.xlu1 %v3004_v51  ;;  %1003 = vmax.xlane.f32.xlu0 %v2999_v47 }
 0x328   : > { %v944_v56 = vpop.f32.mrb[11].mxu1  ;;  %v3015_v59 = vadd.f32 %v2148_v54, %v758_v55  ;;  %v765_v54 = vld [vmem:[%s2821_s22 + $0x70] sm:$0xff] }
 0x329   : > { %v3012_v57 = vadd.f32 %v944_v56, %v757_v52 }
 0x32b   : > { %v2211_v60 = vpop.f32.mrb[18].mxu0  ;;  %1005 = vmax.xlane.f32.xlu1 %v3012_v57  ;;  %1468 = vmax.xlane.f32.xlu0 %v3007_v53 }
 0x32c   : > { %v1409_v62 = vpop.f32.mrb[19].mxu0  ;;  %v3023_v1 = vadd.f32 %v2211_v60, %v1967_v61 }
 0x32d   : > { %v3020_v63 = vadd.f32 %v1966_v58, %v1409_v62  ;;  %v766_v58 = vld [vmem:[%s2821_s22 + $0x78] sm:$0xff]  ;;  %v1974_v62 = vld [vmem:[%s2821_s22 + $0xf0] sm:$0xff] }
 0x32f   : > { %v2151_v2 = vpop.f32.mrb[12].mxu1  ;;  %1470 = vmax.xlane.f32.xlu1 %v3020_v63  ;;  %1007 = vmax.xlane.f32.xlu0 %v3015_v59 }
 0x330   : > { %v954_v4 = vpop.f32.mrb[13].mxu1  ;;  %v3031_v7 = vadd.f32 %v2151_v2, %v760_v3  ;;  %v1975_v3 = vld [vmem:[%s2821_s22 + $0xf8] sm:$0xff]  ;;  %s389_s22 = scalar_lea.vmem [#allocation6], %s1921_s13 }
 0x331   : > { %v3028_v5 = vadd.f32 %v954_v4, %v759_v0  ;;  %s1821_s24 = sshll.u32 %s389_s22, 4  ;;  %s3300_s24 = int_to_ptr.vmem [resolvable:$true] %s1821_s24 }
 0x332   : > { %s2589_s19 = scalar_lea.vmem %s3300_s24, 512  ;;  %p2596_p11 = scmp.lt.s32.totalorder %s3300_s24, %s2594_s23 }
 0x333   : > { %v2214_v8 = vpop.f32.mrb[20].mxu0  ;;  %1009 = vmax.xlane.f32.xlu1 %v3028_v5  ;;  %1472 = vmax.xlane.f32.xlu0 %v3023_v1  ;;  %p2590_p5 = scmp.ne.s32.totalorder %s3300_s24, %s2589_s19  ;;  %p2597_p7 = scmp.lt.s32.totalorder %s2595_s26, %s2589_s19 }
 0x334   : > { %v1419_v12 = vpop.f32.mrb[21].mxu0  ;;  %v3039_v15 = vadd.f32 %v2214_v8, %v1969_v10 }
 0x335   : > { %v3036_v13 = vadd.f32 %v1968_v6, %v1419_v12  ;;  %p2591_p9 = pnand %p2590_p5, %p3366_p6  ;;  %p2598_p8 = por %p2597_p7, %p2596_p11 }
 0x337   : > { %v2154_v17 = vpop.f32.mrb[14].mxu1  ;;  %1474 = vmax.xlane.f32.xlu1 %v3036_v13  ;;  %1011 = vmax.xlane.f32.xlu0 %v3031_v7  ;;  %p2592_p10 = pneg %p2591_p9 }
 0x338   : > { %v964_v20 = vpop.f32.mrb[15].mxu1  ;;  %v3047_v24 = vadd.f32 %v2154_v17, %v762_v19 }
 0x339   : > { %v3044_v22 = vadd.f32 %v964_v20, %v761_v14  ;;  %p2599_p12 = pnand %p2598_p8, %p2592_p10 }
 0x33b   : > { %v2217_v25 = vpop.f32.mrb[22].mxu0  ;;  %1013 = vmax.xlane.f32.xlu1 %v3044_v22  ;;  %1476 = vmax.xlane.f32.xlu0 %v3039_v15 }
 0x33c   : > { %v1429_v27 = vpop.f32.mrb[23].mxu0  ;;  %v3055_v33 = vadd.f32 %v2217_v25, %v1971_v26 }
 0x33d   : > { %v3052_v30 = vadd.f32 %v1970_v23, %v1429_v27 }
 0x33f   : > { %v2157_v34 = vpop.f32.mrb[16].mxu1  ;;  %1478 = vmax.xlane.f32.xlu1 %v3052_v30  ;;  %1015 = vmax.xlane.f32.xlu0 %v3047_v24 }
 0x340   : > { %v974_v42 = vpop.f32.mrb[17].mxu1  ;;  %v3063_v46 = vadd.f32 %v2157_v34, %v764_v36 }
 0x341   : > { %v3060_v43 = vadd.f32 %v974_v42, %v763_v32 }
 0x343   : > { %v2220_v48 = vpop.f32.mrb[24].mxu0  ;;  %1017 = vmax.xlane.f32.xlu1 %v3060_v43  ;;  %1480 = vmax.xlane.f32.xlu0 %v3055_v33 }
 0x344   : > { %v1439_v50 = vpop.f32.mrb[25].mxu0  ;;  %v3071_v55 = vadd.f32 %v2220_v48, %v1973_v49 }
 0x345   : > { %v3068_v52 = vadd.f32 %v1972_v44, %v1439_v50 }
 0x347   : > { %v2160_v56 = vpop.f32.mrb[18].mxu1  ;;  %1482 = vmax.xlane.f32.xlu1 %v3068_v52  ;;  %1019 = vmax.xlane.f32.xlu0 %v3063_v46 }
 0x348   : > { %v984_v60 = vpop.f32.mrb[19].mxu1  ;;  %v3079_v0 = vadd.f32 %v2160_v56, %v766_v58 }
 0x349   : > { %v3076_v61 = vadd.f32 %v984_v60, %v765_v54 }
 0x34b   : > { %v2223_v2 = vpop.f32.mrb[26].mxu0  ;;  %1021 = vmax.xlane.f32.xlu1 %v3076_v61  ;;  %1484 = vmax.xlane.f32.xlu0 %v3071_v55 }
 0x34c   : > { %v1449_v4 = vpop.f32.mrb[27].mxu0  ;;  %v3086_v8 = vadd.f32 %v2223_v2, %v1975_v3 }
 0x34d   : > { %v3084_v6 = vadd.f32 %v1974_v62, %v1449_v4 }
 0x34f   : > { %1486 = vmax.xlane.f32.xlu1 %v3084_v6  ;;  %1023 = vmax.xlane.f32.xlu0 %v3079_v0 }
 0x353   : > { %1488 = vmax.xlane.f32.xlu0 %v3086_v8 }
 0x39f   : > { %v996_v10 = vpop.xlane.xlu1 %995 }
 0x3a0   : > { %v1026_v12 = vsub.f32 %v2965_v16, %v996_v10  ;;  %v994_v14 = vpop.xlane.xlu0 %993 }
 0x3a1   : > { %v1025_v17 = vsub.f32 %v2967_v18, %v994_v14 }
 0x3a2   : > { %v1043_v19 = vmul.f32 1.442695, %v1026_v12 }
 0x3a3   : > { %v1041_v20 = vmul.f32 1.442695, %v1025_v17 }
 0x3a4   : > { %2417 = vpow2.f32 %v1043_v19  ;;  %v1461_v23 = vpop.xlane.xlu0 %1460 }
 0x3a5   : > { %2419 = vpow2.f32 %v1041_v20  ;;  %v1491_v25 = vsub.f32 %v2972_v21, %v1461_v23 }
 0x3a7   : > { %v1508_v26 = vmul.f32 1.442695, %v1491_v25 }
 0x3a8   : > { %v998_v27 = vpop.xlane.xlu1 %997  ;;  %v1459_v32 = vpop.xlane.xlu0 %1458 }
 0x3a9   : > { %2421 = vpow2.f32 %v1508_v26  ;;  %v1027_v34 = vsub.f32 %v2980_v29, %v998_v27  ;;  %v1490_v36 = vsub.f32 %v2978_v28, %v1459_v32 }
 0x3ab   : > { %v1506_v42 = vmul.f32 1.442695, %v1490_v36  ;;  %v1045_v48 = vmul.f32 1.442695, %v1027_v34 }
 0x3ac   : > { %v1463_v16 = vpop.xlane.xlu1 %1462  ;;  %v1000_v44 = vpop.xlane.xlu0 %999 }
 0x3ad   : > { %v1492_v18 = vsub.f32 %v2988_v35, %v1463_v16  ;;  %v1028_v49 = vsub.f32 %v2983_v31, %v1000_v44  ;;  %2423 = vpow2.f32 %v1506_v42 }
 0x3ae   : > { %v3098_v50 = vpop.eup %2417  ;;  %2425 = vpow2.f32 %v1045_v48 }
 0x3af   : > { %v3100_v21 = vpop.eup %2419  ;;  %v1047_v54 = vmul.f32 1.442695, %v1028_v49  ;;  %1075 = vadd.xlane.f32.xlu0 %v3098_v50  ;;  %v1510_v56 = vmul.f32 1.442695, %v1492_v18 }
 0x3b0   : > { %1073 = vadd.xlane.f32.xlu1 %v3100_v21  ;;  %v1002_v29 = vpop.xlane.xlu1 %1001  ;;  %v1465_v28 = vpop.xlane.xlu0 %1464 }
 0x3b1   : > { %v1029_v58 = vsub.f32 %v2996_v45, %v1002_v29  ;;  %v1493_v35 = vsub.f32 %v2991_v41, %v1465_v28  ;;  %2427 = vpow2.f32 %v1047_v54 }
 0x3b2   : > { %2429 = vpow2.f32 %v1510_v56 }
 0x3b3   : > { %v3106_v31 = vpop.eup %2421  ;;  %v1512_v60 = vmul.f32 1.442695, %v1493_v35  ;;  %v1049_v3 = vmul.f32 1.442695, %v1029_v58 }
 0x3b4   : > { %v1467_v62 = vpop.xlane.xlu1 %1466  ;;  %1540 = vadd.xlane.f32.xlu0 %v3106_v31  ;;  %v1004_v2 = vpop.xlane.xlu0 %1003 }
 0x3b5   : > { %v1494_v4 = vsub.f32 %v3004_v51, %v1467_v62  ;;  %v1030_v10 = vsub.f32 %v2999_v47, %v1004_v2  ;;  %2431 = vpow2.f32 %v1512_v60 }
 0x3b6   : > { %2433 = vpow2.f32 %v1049_v3 }
 0x3b7   : > { %v1051_v12 = vmul.f32 1.442695, %v1030_v10  ;;  %v3111_v14 = vpop.eup %2423  ;;  %v1514_v17 = vmul.f32 1.442695, %v1494_v4 }
 0x3b8   : > { %v1006_v45 = vpop.xlane.xlu1 %1005  ;;  %v1469_v41 = vpop.xlane.xlu0 %1468  ;;  %1538 = vadd.xlane.f32.xlu1 %v3111_v14 }
 0x3b9   : > { %v1031_v19 = vsub.f32 %v3012_v57, %v1006_v45  ;;  %v1495_v20 = vsub.f32 %v3007_v53, %v1469_v41  ;;  %2435 = vpow2.f32 %v1051_v12  ;;  %v3116_v23 = vpop.eup %2425 }
 0x3ba   : > { %2437 = vpow2.f32 %v1514_v17 }
 0x3bb   : > { %v1516_v51 = vmul.f32 1.442695, %v1495_v20  ;;  %v3118_v25 = vpop.eup %2427  ;;  %v1053_v27 = vmul.f32 1.442695, %v1031_v19 }
 0x3bc   : > { %v1471_v47 = vpop.xlane.xlu1 %1470  ;;  %v1008_v26 = vpop.xlane.xlu0 %1007  ;;  %1077 = vadd.xlane.f32.xlu1 %v3116_v23  ;;  %1079 = vadd.xlane.f32.xlu0 %v3118_v25 }
 0x3bd   : > { %v1496_v32 = vsub.f32 %v3020_v63, %v1471_v47  ;;  %v1032_v57 = vsub.f32 %v3015_v59, %v1008_v26  ;;  %2439 = vpow2.f32 %v1516_v51  ;;  %v3124_v53 = vpop.eup %2429 }
 0x3be   : > { %2441 = vpow2.f32 %v1053_v27 }
 0x3bf   : > { %v1055_v34 = vmul.f32 1.442695, %v1032_v57  ;;  %v3126_v36 = vpop.eup %2431  ;;  %v1518_v44 = vmul.f32 1.442695, %v1496_v32 }
 0x3c0   : > { %v1010_v42 = vpop.xlane.xlu1 %1009  ;;  %v1473_v16 = vpop.xlane.xlu0 %1472  ;;  %1542 = vadd.xlane.f32.xlu1 %v3124_v53  ;;  %1544 = vadd.xlane.f32.xlu0 %v3126_v36 }
 0x3c1   : > { %v1033_v48 = vsub.f32 %v3028_v5, %v1010_v42  ;;  %v1497_v63 = vsub.f32 %v3023_v1, %v1473_v16  ;;  %2443 = vpow2.f32 %v1055_v34  ;;  %v3132_v59 = vpop.eup %2433 }
 0x3c2   : > { %2445 = vpow2.f32 %v1518_v44 }
 0x3c3   : > { %v1520_v18 = vmul.f32 1.442695, %v1497_v63  ;;  %v3134_v49 = vpop.eup %2435  ;;  %v1057_v28 = vmul.f32 1.442695, %v1033_v48 }
 0x3c4   : > { %v1475_v54 = vpop.xlane.xlu1 %1474  ;;  %v1012_v29 = vpop.xlane.xlu0 %1011  ;;  %1081 = vadd.xlane.f32.xlu1 %v3132_v59  ;;  %1083 = vadd.xlane.f32.xlu0 %v3134_v49 }
 0x3c5   : > { %v1498_v56 = vsub.f32 %v3036_v13, %v1475_v54  ;;  %v1034_v5 = vsub.f32 %v3031_v7, %v1012_v29  ;;  %2447 = vpow2.f32 %v1520_v18  ;;  %v3140_v1 = vpop.eup %2437 }
 0x3c6   : > { %2449 = vpow2.f32 %v1057_v28 }
 0x3c7   : > { %v1059_v58 = vmul.f32 1.442695, %v1034_v5  ;;  %v3142_v35 = vpop.eup %2439  ;;  %v1522_v2 = vmul.f32 1.442695, %v1498_v56 }
 0x3c8   : > { %v1014_v60 = vpop.xlane.xlu1 %1013  ;;  %v1477_v62 = vpop.xlane.xlu0 %1476  ;;  %1546 = vadd.xlane.f32.xlu1 %v3140_v1  ;;  %1548 = vadd.xlane.f32.xlu0 %v3142_v35 }
 0x3c9   : > { %v1035_v3 = vsub.f32 %v3044_v22, %v1014_v60  ;;  %v1499_v13 = vsub.f32 %v3039_v15, %v1477_v62  ;;  %2451 = vpow2.f32 %v1059_v58  ;;  %v3148_v7 = vpop.eup %2441 }
 0x3ca   : > { %2453 = vpow2.f32 %v1522_v2 }
 0x3cb   : > { %v1524_v4 = vmul.f32 1.442695, %v1499_v13  ;;  %v3150_v10 = vpop.eup %2443  ;;  %v1061_v41 = vmul.f32 1.442695, %v1035_v3 }
 0x3cc   : > { %v1479_v12 = vpop.xlane.xlu1 %1478  ;;  %v1016_v45 = vpop.xlane.xlu0 %1015  ;;  %1085 = vadd.xlane.f32.xlu1 %v3148_v7  ;;  %1087 = vadd.xlane.f32.xlu0 %v3150_v10 }
 0x3cd   : > { %v1500_v17 = vsub.f32 %v3052_v30, %v1479_v12  ;;  %v1036_v22 = vsub.f32 %v3047_v24, %v1016_v45  ;;  %2455 = vpow2.f32 %v1524_v4  ;;  %v3156_v15 = vpop.eup %2445 }
 0x3ce   : > { %2457 = vpow2.f32 %v1061_v41 }
 0x3cf   : > { %v1063_v19 = vmul.f32 1.442695, %v1036_v22  ;;  %v3158_v20 = vpop.eup %2447  ;;  %v1526_v26 = vmul.f32 1.442695, %v1500_v17 }
 0x3d0   : > { %v1018_v51 = vpop.xlane.xlu1 %1017  ;;  %v1481_v47 = vpop.xlane.xlu0 %1480  ;;  %1550 = vadd.xlane.f32.xlu1 %v3156_v15  ;;  %1552 = vadd.xlane.f32.xlu0 %v3158_v20 }
 0x3d1   : > { %v1037_v27 = vsub.f32 %v3060_v43, %v1018_v51  ;;  %v1501_v30 = vsub.f32 %v3055_v33, %v1481_v47  ;;  %2459 = vpow2.f32 %v1063_v19  ;;  %v3164_v24 = vpop.eup %2449 }
 0x3d2   : > { %2461 = vpow2.f32 %v1526_v26  ;;  %v697_v26 = vld [vmem:[%s3354_s5] sm:$0xff] }
 0x3d3   : > { %v1528_v32 = vmul.f32 1.442695, %v1501_v30  ;;  %v3166_v57 = vpop.eup %2451  ;;  %v1065_v16 = vmul.f32 1.442695, %v1037_v27  ;;  %v699_v27 = vld [vmem:[%s3354_s5 + $0x10] sm:$0xff]  ;;  %v698_v30 = vld [vmem:[%s3354_s5 + $0x8] sm:$0xff] }
 0x3d4   : > { %v1483_v34 = vpop.xlane.xlu1 %1482  ;;  %v1020_v42 = vpop.xlane.xlu0 %1019  ;;  %1089 = vadd.xlane.f32.xlu1 %v3164_v24  ;;  %1091 = vadd.xlane.f32.xlu0 %v3166_v57 }
 0x3d5   : > { %v1502_v44 = vsub.f32 %v3068_v52, %v1483_v34  ;;  %v1038_v43 = vsub.f32 %v3063_v46, %v1020_v42  ;;  %2463 = vpow2.f32 %v1528_v32  ;;  %v3172_v33 = vpop.eup %2453  ;;  %v700_v32 = vld [vmem:[%s3354_s5 + $0x18] sm:$0xff]  ;;  %v1683_v34 = vld [vmem:[%s3356_s7] sm:$0xff]  ;;  %v1684_v42 = vld [vmem:[%s3356_s7 + $0x8] sm:$0xff] }
 0x3d6   : > { %2465 = vpow2.f32 %v1065_v16  ;;  %v1685_v16 = vld [vmem:[%s3356_s7 + $0x10] sm:$0xff] }
 0x3d7   : > { %v1067_v48 = vmul.f32 1.442695, %v1038_v43  ;;  %v3174_v63 = vpop.eup %2455  ;;  %v1530_v29 = vmul.f32 1.442695, %v1502_v44  ;;  %v1686_v44 = vld [vmem:[%s3356_s7 + $0x18] sm:$0xff] }
 0x3d8   : > { %v1022_v18 = vpop.xlane.xlu1 %1021  ;;  %v1485_v54 = vpop.xlane.xlu0 %1484  ;;  %1554 = vadd.xlane.f32.xlu1 %v3172_v33  ;;  %1556 = vadd.xlane.f32.xlu0 %v3174_v63 }
 0x3d9   : > { %v1039_v28 = vsub.f32 %v3076_v61, %v1022_v18  ;;  %v1503_v52 = vsub.f32 %v3071_v55, %v1485_v54  ;;  %2467 = vpow2.f32 %v1067_v48  ;;  %v3180_v46 = vpop.eup %2457 }
 0x3da   : > { %2469 = vpow2.f32 %v1530_v29 }
 0x3db   : > { %v1532_v56 = vmul.f32 1.442695, %v1503_v52  ;;  %v3182_v5 = vpop.eup %2459  ;;  %v1069_v62 = vmul.f32 1.442695, %v1039_v28 }
 0x3dc   : > { %v1487_v58 = vpop.xlane.xlu1 %1486  ;;  %v1024_v60 = vpop.xlane.xlu0 %1023  ;;  %1093 = vadd.xlane.f32.xlu1 %v3180_v46  ;;  %1095 = vadd.xlane.f32.xlu0 %v3182_v5 }
 0x3dd   : > { %v1040_v61 = vsub.f32 %v3079_v0, %v1024_v60  ;;  %2471 = vpow2.f32 %v1532_v56  ;;  %v1504_v2 = vsub.f32 %v3084_v6, %v1487_v58  ;;  %v3188_v55 = vpop.eup %2461 }
 0x3de   : > { %2473 = vpow2.f32 %v1069_v62 }
 0x3df   : > { %v1071_v3 = vmul.f32 1.442695, %v1040_v61  ;;  %v3190_v13 = vpop.eup %2463  ;;  %v1534_v45 = vmul.f32 1.442695, %v1504_v2 }
 0x3e0   : > { %v1489_v4 = vpop.xlane.xlu0 %1488  ;;  %1558 = vadd.xlane.f32.xlu1 %v3188_v55  ;;  %1560 = vadd.xlane.f32.xlu0 %v3190_v13  ;;  %v3195_v41 = vpop.eup %2465 }
 0x3e1   : > { %v1505_v12 = vsub.f32 %v3086_v8, %v1489_v4  ;;  %2475 = vpow2.f32 %v1071_v3 }
 0x3e3   : > { %v1536_v0 = vmul.f32 1.442695, %v1505_v12  ;;  %v3197_v17 = vpop.eup %2467 }
 0x3e4   : > { %1097 = vadd.xlane.f32.xlu1 %v3195_v41  ;;  %1099 = vadd.xlane.f32.xlu0 %v3197_v17  ;;  %v3201_v6 = vpop.eup %2469 }
 0x3e5   : > { %2477 = vpow2.f32 %v1536_v0 }
 0x3e6   : > { %2479 = vpow2.f32 %v1534_v45 }
 0x3e7   : > { %v3203_v22 = vpop.eup %2471 }
 0x3e8   : > { %1562 = vadd.xlane.f32.xlu1 %v3201_v6  ;;  %1564 = vadd.xlane.f32.xlu0 %v3203_v22  ;;  %v3207_v8 = vpop.eup %2473 }
 0x3eb   : > { %v3209_v19 = vpop.eup %2475 }
 0x3ec   : > { %1101 = vadd.xlane.f32.xlu1 %v3207_v8  ;;  %1103 = vadd.xlane.f32.xlu0 %v3209_v19 }
 0x3ef   : > { %v3213_v51 = vpop.eup %2477 }
 0x3f0   : > { %v3215_v47 = vpop.eup %2479  ;;  %1568 = vadd.xlane.f32.xlu0 %v3213_v51 }
 0x3f1   : > { %1566 = vadd.xlane.f32.xlu1 %v3215_v47 }
 0x402   : > { %703 = vperm.xlu1 %2414, %v697_v26  }
 0x406   : > { %713 = vperm.xlu1 %2414, %v699_v27   ;;  %708 = vperm.xlu0 %2413, %v698_v30  }
 0x40a   : > { %718 = vperm.xlu1 %2414, %v700_v32   ;;  %1689 = vperm.xlu0 %2413, %v1683_v34  }
 0x40e   : > { %1694 = vperm.xlu1 %2414, %v1684_v42   ;;  %1699 = vperm.xlu0 %2413, %v1685_v16  }
 0x412   : > { %1704 = vperm.xlu1 %2414, %v1686_v44  }
 0x43c   : > { %v1076_v43 = vpop.xlane.xlu0 %1075 }
 0x43d   : > { %2481 = vrcp.f32 %v1076_v43  ;;  %v1074_v48 = vpop.xlane.xlu1 %1073 }
 0x43e   : > { %2483 = vrcp.f32 %v1074_v48 }
 0x441   : > { %v1541_v18 = vpop.xlane.xlu0 %1540 }
 0x442   : > { %2485 = vrcp.f32 %v1541_v18 }
 0x445   : > { %v1539_v54 = vpop.xlane.xlu1 %1538 }
 0x446   : > { %2487 = vrcp.f32 %v1539_v54 }
 0x447   : > { %v2482_v29 = vpop.eup %2481 }
 0x448   : > { %v2484_v28 = vpop.eup %2483  ;;  %v1122_v52 = vmul.f32 %v2482_v29, %v3098_v50 }
 0x449   : > { %v1121_v56 = vmul.f32 %v2484_v28, %v3100_v21  ;;  %v1078_v58 = vpop.xlane.xlu1 %1077  ;;  %v1080_v60 = vpop.xlane.xlu0 %1079 }
 0x44a   : > { %2489 = vrcp.f32 %v1078_v58 }
 0x44b   : > { %v2285_v62 = vpack.c.bf16 %v1122_v52, %v1121_v56  ;;  %2491 = vrcp.f32 %v1080_v60 }
 0x44c   : > { %v2486_v3 = vpop.eup %2485 }
 0x44d   : > { %2286 = vmatprep.subr.bf16.mxu1 %v2285_v62  ;;  %v1543_v61 = vpop.xlane.xlu1 %1542  ;;  %v1545_v2 = vpop.xlane.xlu0 %1544  ;;  %v1587_v50 = vmul.f32 %v2486_v3, %v3106_v31 }
 0x44e   : > { %2288 = vmatpush3.bf16.xpose.msra.mxu1 %v2285_v62  ;;  %2493 = vrcp.f32 %v1543_v61 }
 0x44f   : > { %2495 = vrcp.f32 %v1545_v2 }
 0x450   : > { %v2488_v4 = vpop.eup %2487 }
 0x451   : > { %v1082_v12 = vpop.xlane.xlu1 %1081  ;;  %v1084_v45 = vpop.xlane.xlu0 %1083  ;;  %v1586_v0 = vmul.f32 %v2488_v4, %v3111_v14 }
 0x452   : > { %2497 = vrcp.f32 %v1082_v12 }
 0x453   : > { %2499 = vrcp.f32 %v1084_v45  ;;  %v2321_v21 = vpack.c.bf16 %v1587_v50, %v1586_v0 }
 0x454   : > { %v2490_v26 = vpop.eup %2489 }
 0x455   : > { %v2492_v27 = vpop.eup %2491  ;;  %v1547_v30 = vpop.xlane.xlu1 %1546  ;;  %2322 = vmatprep.subr.bf16.mxu0 %v2321_v21  ;;  %v1123_v34 = vmul.f32 %v2490_v26, %v3116_v23 }
 0x456   : > { %v1549_v32 = vpop.xlane.xlu0 %1548  ;;  %2501 = vrcp.f32 %v1547_v30  ;;  %2324 = vmatpush3.bf16.xpose.msra.mxu0 %v2321_v21  ;;  %v1124_v42 = vmul.f32 %v2492_v27, %v3118_v25 }
 0x457   : > { %2503 = vrcp.f32 %v1549_v32 }
 0x458   : > { %v2494_v16 = vpop.eup %2493  ;;  %v2289_v44 = vpack.c.bf16 %v1124_v42, %v1123_v34 }
 0x459   : > { %v2496_v14 = vpop.eup %2495  ;;  %v1086_v43 = vpop.xlane.xlu1 %1085  ;;  %v1588_v48 = vmul.f32 %v2494_v16, %v3124_v53 }
 0x45a   : > { %v1088_v31 = vpop.xlane.xlu0 %1087  ;;  %2505 = vrcp.f32 %v1086_v43  ;;  %2290 = vmatprep.subr.bf16.mxu1 %v2289_v44  ;;  %v1589_v18 = vmul.f32 %v2496_v14, %v3126_v36 }
 0x45b   : > { %2507 = vrcp.f32 %v1088_v31  ;;  %2292 = vmatpush3.bf16.xpose.msra.mxu1 %v2289_v44 }
 0x45c   : > { %v2498_v54 = vpop.eup %2497  ;;  %v2325_v23 = vpack.c.bf16 %v1589_v18, %v1588_v48 }
 0x45d   : > { %v2500_v29 = vpop.eup %2499  ;;  %v1551_v28 = vpop.xlane.xlu1 %1550  ;;  %v1125_v25 = vmul.f32 %v2498_v54, %v3132_v59 }
 0x45e   : > { %v1553_v52 = vpop.xlane.xlu0 %1552  ;;  %2509 = vrcp.f32 %v1551_v28  ;;  %2326 = vmatprep.subr.bf16.mxu0 %v2325_v23  ;;  %v1126_v56 = vmul.f32 %v2500_v29, %v3134_v49 }
 0x45f   : > { %2511 = vrcp.f32 %v1553_v52  ;;  %2328 = vmatpush3.bf16.xpose.msra.mxu0 %v2325_v23 }
 0x460   : > { %v2502_v53 = vpop.eup %2501  ;;  %v2293_v58 = vpack.c.bf16 %v1126_v56, %v1125_v25 }
 0x461   : > { %v2504_v60 = vpop.eup %2503  ;;  %v1090_v62 = vpop.xlane.xlu1 %1089  ;;  %v1590_v61 = vmul.f32 %v2502_v53, %v3140_v1 }
 0x462   : > { %v1092_v36 = vpop.xlane.xlu0 %1091  ;;  %2513 = vrcp.f32 %v1090_v62  ;;  %2294 = vmatprep.subr.bf16.mxu1 %v2293_v58  ;;  %v1591_v2 = vmul.f32 %v2504_v60, %v3142_v35 }
 0x463   : > { %2515 = vrcp.f32 %v1092_v36  ;;  %2296 = vmatpush3.bf16.xpose.msra.mxu1 %v2293_v58 }
 0x464   : > { %v2506_v59 = vpop.eup %2505  ;;  %v2329_v3 = vpack.c.bf16 %v1591_v2, %v1590_v61 }
 0x465   : > { %v2508_v4 = vpop.eup %2507  ;;  %v1555_v12 = vpop.xlane.xlu1 %1554  ;;  %v1127_v45 = vmul.f32 %v2506_v59, %v3148_v7 }
 0x466   : > { %v1557_v49 = vpop.xlane.xlu0 %1556  ;;  %2517 = vrcp.f32 %v1555_v12  ;;  %2330 = vmatprep.subr.bf16.mxu0 %v2329_v3  ;;  %v1128_v0 = vmul.f32 %v2508_v4, %v3150_v10 }
 0x467   : > { %2519 = vrcp.f32 %v1557_v49  ;;  %2332 = vmatpush3.bf16.xpose.msra.mxu0 %v2329_v3 }
 0x468   : > { %v2510_v1 = vpop.eup %2509  ;;  %v2297_v50 = vpack.c.bf16 %v1128_v0, %v1127_v45 }
 0x469   : > { %v2512_v21 = vpop.eup %2511  ;;  %v1094_v26 = vpop.xlane.xlu1 %1093  ;;  %v1592_v27 = vmul.f32 %v2510_v1, %v3156_v15 }
 0x46a   : > { %v1096_v35 = vpop.xlane.xlu0 %1095  ;;  %2521 = vrcp.f32 %v1094_v26  ;;  %2298 = vmatprep.subr.bf16.mxu1 %v2297_v50  ;;  %v1593_v30 = vmul.f32 %v2512_v21, %v3158_v20 }
 0x46b   : > { %2523 = vrcp.f32 %v1096_v35  ;;  %2300 = vmatpush3.bf16.xpose.msra.mxu1 %v2297_v50 }
 0x46c   : > { %v2514_v7 = vpop.eup %2513  ;;  %v2333_v32 = vpack.c.bf16 %v1593_v30, %v1592_v27 }
 0x46d   : > { %v2516_v34 = vpop.eup %2515  ;;  %v1559_v42 = vpop.xlane.xlu1 %1558  ;;  %v1129_v16 = vmul.f32 %v2514_v7, %v3164_v24 }
 0x46e   : > { %v1561_v10 = vpop.xlane.xlu0 %1560  ;;  %2525 = vrcp.f32 %v1559_v42  ;;  %2334 = vmatprep.subr.bf16.mxu0 %v2333_v32  ;;  %v1130_v44 = vmul.f32 %v2516_v34, %v3166_v57 }
 0x46f   : > { %2527 = vrcp.f32 %v1561_v10  ;;  %2336 = vmatpush3.bf16.xpose.msra.mxu0 %v2333_v32 }
 0x470   : > { %v2518_v15 = vpop.eup %2517  ;;  %v2301_v14 = vpack.c.bf16 %v1130_v44, %v1129_v16 }
 0x471   : > { %v2520_v43 = vpop.eup %2519  ;;  %v1098_v31 = vpop.xlane.xlu1 %1097  ;;  %v1594_v48 = vmul.f32 %v2518_v15, %v3172_v33 }
 0x472   : > { %v1100_v20 = vpop.xlane.xlu0 %1099  ;;  %2529 = vrcp.f32 %v1098_v31  ;;  %2302 = vmatprep.subr.bf16.mxu1 %v2301_v14  ;;  %v1595_v18 = vmul.f32 %v2520_v43, %v3174_v63 }
 0x473   : > { %2531 = vrcp.f32 %v1100_v20  ;;  %2304 = vmatpush3.bf16.xpose.msra.mxu1 %v2301_v14 }
 0x474   : > { %v2522_v24 = vpop.eup %2521  ;;  %v2337_v54 = vpack.c.bf16 %v1595_v18, %v1594_v48 }
 0x475   : > { %v2524_v23 = vpop.eup %2523  ;;  %v1563_v29 = vpop.xlane.xlu1 %1562  ;;  %v1131_v28 = vmul.f32 %v2522_v24, %v3180_v46 }
 0x476   : > { %v1565_v57 = vpop.xlane.xlu0 %1564  ;;  %2533 = vrcp.f32 %v1563_v29  ;;  %2338 = vmatprep.subr.bf16.mxu0 %v2337_v54  ;;  %v1132_v52 = vmul.f32 %v2524_v23, %v3182_v5 }
 0x477   : > { %2535 = vrcp.f32 %v1565_v57  ;;  %2340 = vmatpush3.bf16.xpose.msra.mxu0 %v2337_v54 }
 0x478   : > { %v2526_v33 = vpop.eup %2525  ;;  %v2305_v25 = vpack.c.bf16 %v1132_v52, %v1131_v28 }
 0x479   : > { %v2528_v56 = vpop.eup %2527  ;;  %v1102_v53 = vpop.xlane.xlu1 %1101  ;;  %v1596_v58 = vmul.f32 %v2526_v33, %v3188_v55 }
 0x47a   : > { %v1104_v63 = vpop.xlane.xlu0 %1103  ;;  %2537 = vrcp.f32 %v1102_v53  ;;  %2306 = vmatprep.subr.bf16.mxu1 %v2305_v25  ;;  %v1597_v60 = vmul.f32 %v2528_v56, %v3190_v13  ;;  %v1681_v56 = vld [vmem:[%s3355_s6 + $0x10] sm:$0xff]  ;;  %v1682_v53 = vld [vmem:[%s3355_s6 + $0x18] sm:$0xff] }
 0x47b   : > { %2539 = vrcp.f32 %v1104_v63  ;;  %2308 = vmatpush3.bf16.xpose.msra.mxu1 %v2305_v25  ;;  %v1680_v25 = vld [vmem:[%s3355_s6 + $0x8] sm:$0xff] }
 0x47c   : > { %v2530_v46 = vpop.eup %2529  ;;  %v2341_v62 = vpack.c.bf16 %v1597_v60, %v1596_v58 }
 0x47d   : > { %v2532_v36 = vpop.eup %2531  ;;  %v1133_v2 = vmul.f32 %v2530_v46, %v3195_v41 }
 0x47e   : > { %v1567_v61 = vpop.xlane.xlu1 %1566  ;;  %v1569_v5 = vpop.xlane.xlu0 %1568  ;;  %2342 = vmatprep.subr.bf16.mxu0 %v2341_v62  ;;  %v1134_v59 = vmul.f32 %v2532_v36, %v3197_v17 }
 0x47f   : > { %2541 = vrcp.f32 %v1567_v61  ;;  %2344 = vmatpush3.bf16.xpose.msra.mxu0 %v2341_v62 }
 0x480   : > { %2543 = vrcp.f32 %v1569_v5  ;;  %v2534_v55 = vpop.eup %2533  ;;  %v2309_v3 = vpack.c.bf16 %v1134_v59, %v1133_v2 }
 0x481   : > { %v2536_v4 = vpop.eup %2535  ;;  %v1598_v13 = vmul.f32 %v2534_v55, %v3201_v6 }
 0x482   : > { %2310 = vmatprep.subr.bf16.mxu1 %v2309_v3  ;;  %v1599_v12 = vmul.f32 %v2536_v4, %v3203_v22 }
 0x483   : > { %2312 = vmatpush3.bf16.xpose.msra.mxu1 %v2309_v3 }
 0x484   : > { %v2538_v49 = vpop.eup %2537  ;;  %v2345_v45 = vpack.c.bf16 %v1599_v12, %v1598_v13 }
 0x485   : > { %v2540_v0 = vpop.eup %2539  ;;  %v1135_v41 = vmul.f32 %v2538_v49, %v3207_v8  ;;  %v1679_v8 = vld [vmem:[%s3355_s6] sm:$0xff] }
 0x486   : > { %2346 = vmatprep.subr.bf16.mxu0 %v2345_v45  ;;  %v1136_v1 = vmul.f32 %v2540_v0, %v3209_v19  ;;  %v704_v19 = vpop.permute.xlu1 %703 }
 0x487   : > { %2348 = vmatpush3.bf16.xpose.msra.mxu0 %v2345_v45 }
 0x488   : > { %v2313_v50 = vpack.c.bf16 %v1136_v1, %v1135_v41 }
 0x489   : > { %v2542_v17 = vpop.eup %2541 }
 0x48a   : > { %v2544_v21 = vpop.eup %2543  ;;  %v1600_v26 = vmul.f32 %v2542_v17, %v3215_v47  ;;  %2314 = vmatprep.subr.bf16.mxu1 %v2313_v50  ;;  %v714_v35 = vpop.permute.xlu1 %713 }
 0x48b   : > { %v1601_v6 = vmul.f32 %v2544_v21, %v3213_v51  ;;  %2316 = vmatpush3.bf16.xpose.msra.mxu1 %v2313_v50  ;;  %v709_v47 = vpop.permute.xlu0 %708  ;;  %v721_v51 = vadd.f32 %v704_v19, %v2921_v38 }
 0x48c   : > { %v722_v27 = vadd.f32 %v2919_v37, %v709_v47 }
 0x48d   : > { %v2349_v22 = vpack.c.bf16 %v1601_v6, %v1600_v26 }
 0x48e   : > { %v719_v30 = vpop.permute.xlu1 %718  ;;  %v1941_v7 = vmul.f32 -1.442695, %v722_v27 }
 0x48f   : > { %2350 = vmatprep.subr.bf16.mxu0 %v2349_v22  ;;  %v724_v32 = vadd.f32 %v2923_v39, %v719_v30  ;;  %v1690_v58 = vpop.permute.xlu0 %1689 }
 0x490   : > { %2352 = vmatpush3.bf16.xpose.msra.mxu0 %v2349_v22  ;;  %2545 = vpow2.f32 %v1941_v7 }
 0x491   : > { %v1943_v34 = vmul.f32 -1.442695, %v724_v32 }
 0x492   : > { %2194 = vmatmul.mubr.f32.vlgmr.msra.gmra.mrb[20].mxu1 %v2959_v9  ;;  %v1940_v9 = vmul.f32 -1.442695, %v721_v51  ;;  %v1695_v63 = vpop.permute.xlu1 %1694 }
 0x493   : > { %2267 = vmatprep.mubr.msk.f32.mxu1 %vm503_vm0, %v1679_v8  ;;  %v1700_v2 = vpop.permute.xlu0 %1699 }
 0x494   : > { %2547 = vpow2.f32 %v1940_v9 }
 0x495   : > { %2549 = vpow2.f32 %v1943_v34 }
 0x496   : > { %v1705_v61 = vpop.permute.xlu1 %1704 }
 0x497   : > { %2257 = vmatmul.mubr.f32.vlgmr.msra.gmra.mrb[28].mxu0 %v2961_v11  ;;  %v723_v11 = vadd.f32 %v714_v35, %v2925_v40 }
 0x499   : > { %v1942_v42 = vmul.f32 -1.442695, %v723_v11 }
 0x49a   : > { %v2546_v10 = vpop.eup %2545 }
 0x49b   : > { %2551 = vpow2.f32 %v1942_v42  ;;  %v738_v44 = vadd.f32 1.0, %v2546_v10 }
 0x49d   : > { %2553 = vrcp.f32 %v738_v44 }
 0x49e   : > { %v2548_v16 = vpop.eup %2547 }
 0x49f   : > { %v2550_v15 = vpop.eup %2549  ;;  %v737_v37 = vadd.f32 1.0, %v2548_v16 }
 0x4a0   : > { %v740_v38 = vadd.f32 1.0, %v2550_v15 }
 0x4a1   : > { %2555 = vrcp.f32 %v737_v37 }
 0x4a2   : > { %2557 = vrcp.f32 %v740_v38 }
 0x4a5   : > { %v2552_v14 = vpop.eup %2551 }
 0x4a6   : > { %v739_v43 = vadd.f32 1.0, %v2552_v14 }
 0x4a7   : > { %v2554_v39 = vpop.eup %2553 }
 0x4a8   : > { %2559 = vrcp.f32 %v739_v43 }
 0x4ab   : > { %v2556_v31 = vpop.eup %2555 }
 0x4ac   : > { %v2558_v24 = vpop.eup %2557 }
 0x4b2   : > { %v2560_v29 = vpop.eup %2559 }
 0x565   : > { %v2195_v40 = vpop.f32.mrb[20].mxu1 }
 0x566   : > { %v1213_v20 = vmul.f32 %v2554_v39, %v2195_v40  ;;  %v1203_v48 = vpop.f32.mrb[21].mxu1 }
 0x567   : > { %v1212_v18 = vmul.f32 %v2556_v31, %v1203_v48 }
 0x569   : > { %v2353_v54 = vpack.c.bf16 %v1213_v20, %v1212_v18 }
 0x56a   : > { %v2258_v23 = vpop.f32.mrb[28].mxu0 }
 0x56b   : > { %v1678_v57 = vmul.f32 %v2558_v24, %v2258_v23  ;;  %v1668_v28 = vpop.f32.mrb[29].mxu0  ;;  %2354 = vmatprep.subr.bf16.mxu1 %v2353_v54 }
 0x56c   : > { %v1677_v52 = vmul.f32 %v2560_v29, %v1668_v28  ;;  %2356 = vmatpush3.bf16.msra.mxu1 %v2353_v54 }
 0x56e   : > { %v2357_v33 = vpack.c.bf16 %v1678_v57, %v1677_v52 }
 0x570   : > { %2358 = vmatprep.subr.bf16.mxu1 %v2357_v33 }
 0x571   : > { %2360 = vmatpush3.bf16.msra.mxu1 %v2357_v33 }
 0x574   : > { %2268 = vmatmul.mubr.msk.f32.vlgmr.msra.gmra.mrb[22].mxu1 %vm503_vm0, %v1680_v25 }
 0x575   : > { %2270 = vmatprep.mubr.msk.f32.mxu1 %vm503_vm0, %v1681_v56 }
 0x578   : > { %2271 = vmatmul.mubr.msk.f32.gmra.mrb[24].mxu1 %vm503_vm0, %v1682_v53 }
 0x647   : > { %v2269_v60 = vpop.f32.mrb[22].mxu1 }
 0x648   : > { %v1791_v46 = vadd.f32 %v2269_v60, %v1695_v63  ;;  %v1785_v62 = vpop.f32.mrb[23].mxu1 }
 0x649   : > { %v1786_v36 = vadd.f32 %v1785_v62, %v1690_v58 }
 0x64a   : > { %1805 = vst [vmem:[%s389_s22 + $0x8] sm:$0xff] %v1791_v46 }
 0x64b   : > { %1804 = vst [vmem:[%s389_s22] sm:$0xff] %v1786_v36  ;;  %v2272_v5 = vpop.f32.mrb[24].mxu1 }
 0x64c   : > { %v1801_v59 = vadd.f32 %v2272_v5, %v1705_v61  ;;  %v1795_v55 = vpop.f32.mrb[25].mxu1 }
 0x64d   : > { %v1796_v3 = vadd.f32 %v1795_v55, %v1700_v2 }
 0x64e   : > { %1807 = vst [vmem:[%s389_s22 + $0x18] sm:$0xff] %v1801_v59 }
 0x64f   : > { %1806 = vst [vmem:[%s389_s22 + $0x10] sm:$0xff] %v1796_v3 }
 0x650   : > { %2602 = shalt.err (!%p2599_p12)
}
 0x651   : > { %s2603_s0 = scalar_lea.hbm %s3305_s15, 512  ;;  %s2607_s22 = scalar_lea.hbm %s3357_s8, 1024 }
 0x652   : > { %p2604_p13 = scmp.ne.s32.totalorder %s3305_s15, %s2603_s0  ;;  %p2608_p0 = scmp.lt.u32.totalorder %s3305_s15, %s3357_s8 }
 0x653   : > { %p2609_p3 = scmp.lt.u32.totalorder %s2607_s22, %s2603_s0  ;;  %p2611_p5 = scmp.lt.u32.totalorder %s2603_s0, %s3305_s15 }
 0x654   : > { %p2605_p1 = pnand %p2604_p13, %p3366_p6 }
 0x655   : > { %p2610_p4 = por %p2609_p3, %p2608_p0 }
 0x656   : > { %p2606_p2 = pneg %p2605_p1 }
 0x657   : > { %p2612_p9 = por %p2611_p5, %p2610_p4 }
 0x659   : > { %p2613_p10 = pnand %p2612_p9, %p2606_p2 }
 0x65b   : > { %2616 = shalt.err (!%p2613_p10)
}
 0x65c   : > { %s2662_s13 = smov 128   ;;  %s2663_s19 = smov 256  }
 0x65d   : > { %s2664_s20 = smov 8  }
 0x65e   : > { %2367 = dma.vmem_to_hbm [thread:$0]  (%p3366_p6), %s3300_s24, 512, %s3305_s15, %s1809_s9, %s2662_s13, %s2663_s19, %s2664_s20  }
 0x65f PF: > { %s1836_s23 = sand.u32 1, %s2643_s27   ;;  %p3367_p11 = scmp.ne.s32.totalorder %s3364_s18, 0 }
 0x660   : > { %p3368_p7 = scmp.ge.s32.totalorder %s2655_s30, 2  ;;  %s1837_s26 = scalar_lea.sflag [#allocation5], %s1836_s23 }
 0x662   : > { %p2370_p8 = pnand %p3368_p7, %p3367_p11 }
 0x664   : > { %2638 = dma.done.wait (!%p2370_p8), %s1837_s26, 512  }
 0x665   : > { %2640 = vsyncadd (!%p2370_p8), %s1837_s26, 4294966784  ;;  %p21_p12 = scmp.ge.s32.totalorder %s2735_s11, 4   ;;  %s3369_s27 = smov %s2647_s28 }
 0x666   : > { %s3370_s28 = smov %s2651_s29  ;;  %s3371_s29 = smov %s2747_s14 }
 0x667   : > { %s3372_s30 = smov %s2735_s11  ;;  %23 = sbr.rel (!%p21_p12) target bundleno = 7 (0x7), region = 144 }
 0x66e   :  { %1842 = vsyncpa [#allocation4], 1 }
 0x66f   :  { %1844 = vsyncpa [#allocation4 + $0x1], 1 }
 0x670   :  { %1845 = vsyncpa [#allocation5], 1 }
 0x671   :  { %1847 = vsyncpa [#allocation5 + $0x1], 1 }

</bundles_post_ra>
